<compile_context>
chip_gen: v6e
topology: v6e:2x2x1
jax: 0.10.0
libtpu: 0.0.40
codegen_flags: <defaults>
</compile_context>

<pallas_src>
import numpy as np
import jax
import jax.numpy as jnp
from jax import lax
from jax.experimental import pallas as pl
from jax.experimental.pallas import tpu as pltpu


# ----------------------------- math helpers ---------------------------------

def _softplus_beta(x, beta):
    # Matches torch.nn.Softplus(beta=beta, threshold=20): linear above threshold.
    bx = beta * x
    return jnp.where(bx > 20.0, x, jnp.log1p(jnp.exp(jnp.minimum(bx, 20.0))) / beta)


# ------------------------------ Pallas kernel --------------------------------

def hawkes_lstm_kernel(xwdt_ref, wh_ref, h0_ref, c0_ref, ct0_ref, out_ref):
    """One grid step = one batch chunk; the full time recurrence runs in-kernel.

    xwdt_ref : (T, bb, 7H+1)  precomputed [x @ Wx_fused + b  ||  dt]
    wh_ref   : (H, 7H)        fused recurrent weights (all 7 gates)
    h0/c0/ct0: (bb, H)        initial state for this batch chunk
    out_ref  : (T, bb, 5H)    packed per-step outputs
                              [hiddens_ti | outputs | cells | cell_targets | decays]
    """
    T = xwdt_ref.shape[0]
    H = h0_ref.shape[-1]
    G = 7 * H

    # Loop-invariant: load the fused recurrent weight once (lives in vregs).
    wh = wh_ref[...]                                  # (H, 7H)

    # vreg-resident carried state (no VMEM scratch round-trip per step).
    init = (h0_ref[...], c0_ref[...], ct0_ref[...])

    def step(t, carry):
        h, c, ct = carry
        slab = xwdt_ref[t]                            # (bb, 7H+1)
        # Single fused recurrent matmul per step (N = 7H lanes).
        pre = slab[:, :G] + jnp.dot(h, wh, preferred_element_type=jnp.float32)
        dt = slab[:, G:]                              # (bb, 1)

        # Gate order: [input_g, forget_g, output_g, input_target, forget_target, z, decay]
        sg = jax.nn.sigmoid(pre[:, :5 * H])           # one fused EUP pass for 5 gates
        z = jnp.tanh(pre[:, 5 * H:6 * H])
        decay = _softplus_beta(pre[:, 6 * H:], 10.0)

        inpt   = sg[:, 0 * H:1 * H]
        forget = sg[:, 1 * H:2 * H]
        output = sg[:, 2 * H:3 * H]
        in_tgt = sg[:, 3 * H:4 * H]
        fg_tgt = sg[:, 4 * H:5 * H]

        # HawkesLSTMCell state update + decay toward c_target over interval dt.
        c_i    = forget * c + inpt * z
        ct_new = fg_tgt * ct + in_tgt * z
        c_new  = ct_new + (c_i - ct_new) * jnp.exp(-decay * dt)
        h_new  = output * jnp.tanh(c_new)

        # One lane-dense (bb, 5H) store per step instead of 5 masked 32-lane stores.
        out_ref[t] = jnp.concatenate([h_new, output, c_i, ct_new, decay], axis=-1)
        return (h_new, c_new, ct_new)

    # Full unroll for small static T (LLO scheduler visibility); partial for long T.
    unroll = True if T <= 32 else 8
    lax.fori_loop(0, T, step, init, unroll=unroll)


# ------------------------------ JAX wrapper -----------------------------------

def hawkes_lstm_forward(x_seq, dt_seq, wx, wh, b, h0, c0, ct0, *, batch_block=None):
    """x_seq: (T,B,D) f32; dt_seq: (T,B) f32; wx: (D,7H); wh: (H,7H); b: (7H,)."""
    T, B, D = x_seq.shape
    H = h0.shape[-1]
    G = 7 * H
    # v7x note: with real batch sizes pick batch_block = B//2 (multiple of 8) so the
    # "parallel" grid axis shards across the two TensorCores; keep bb=B on v5e/v6e.
    bb = B if batch_block is None else batch_block
    assert B % bb == 0 and (bb == B or bb % 8 == 0), \
        "batch chunk must be full or a multiple of 8"

    # Hoist the input projection off the recurrence: one (T*B, D) x (D, 7H) matmul
    # with a real MXU M dimension, done once (XLA). Only h @ Wh stays in the loop.
    xw = jnp.einsum('tbd,dg->tbg', x_seq.astype(jnp.float32), wx,
                    precision=lax.Precision.HIGHEST) + b[None, None, :]
    # Append dt as the last column -> no lane-padded (T,B,1) block for dt.
    xwdt = jnp.concatenate([xw, dt_seq.astype(jnp.float32)[..., None]], axis=-1)

    grid_spec = pltpu.PrefetchScalarGridSpec(
        num_scalar_prefetch=0,
        grid=(B // bb,),                                        # batch chunks (parallel)
        in_specs=[
            pl.BlockSpec((T, bb, G + 1), lambda i: (0, i, 0)),  # [x@Wx+b || dt] chunk
            pl.BlockSpec((H, G), lambda i: (0, 0)),             # fused Wh (resident)
            pl.BlockSpec((bb, H), lambda i: (i, 0)),            # h0 chunk
            pl.BlockSpec((bb, H), lambda i: (i, 0)),            # c0 chunk
            pl.BlockSpec((bb, H), lambda i: (i, 0)),            # c_target0 chunk
        ],
        out_specs=pl.BlockSpec((T, bb, 5 * H), lambda i: (0, i, 0)),
    )
    out = pl.pallas_call(
        hawkes_lstm_kernel,
        out_shape=jax.ShapeDtypeStruct((T, B, 5 * H), jnp.float32),
        grid_spec=grid_spec,
        compiler_params=pltpu.CompilerParams(
            dimension_semantics=("parallel",)),                 # batch is embarrassingly parallel
    )(xwdt, wh, h0, c0, ct0)

    # Split the packed output back into (hiddens_ti, outputs, cells, cell_targets, decays).
    return (out[..., 0 * H:1 * H], out[..., 1 * H:2 * H], out[..., 2 * H:3 * H],
            out[..., 3 * H:4 * H], out[..., 4 * H:5 * H])


# ------------------------- pure-JAX reference (scan) --------------------------

def hawkes_lstm_ref(x_seq, dt_seq, wx, wh, b, h0, c0, ct0):
    H = h0.shape[-1]

    def step(carry, inp):
        h, c, ct = carry
        x, dt = inp
        pre = (jnp.dot(x, wx, precision=lax.Precision.HIGHEST) + b
               + jnp.dot(h, wh, precision=lax.Precision.HIGHEST))       # (B, 7H)
        sg = jax.nn.sigmoid(pre[:, :5 * H])
        inpt   = sg[:, 0 * H:1 * H]
        forget = sg[:, 1 * H:2 * H]
        output = sg[:, 2 * H:3 * H]
        in_tgt = sg[:, 3 * H:4 * H]
        fg_tgt = sg[:, 4 * H:5 * H]
        z      = jnp.tanh(pre[:, 5 * H:6 * H])
        decay  = _softplus_beta(pre[:, 6 * H:7 * H], 10.0)
        c_i    = forget * c + inpt * z
        ct_new = fg_tgt * ct + in_tgt * z
        c_new  = ct_new + (c_i - ct_new) * jnp.exp(-decay * dt[:, None])
        h_new  = output * jnp.tanh(c_new)
        return (h_new, c_new, ct_new), (h_new, output, c_i, ct_new, decay)

    _, outs = lax.scan(step, (h0, c0, ct0), (x_seq, dt_seq))
    return outs


# ----------------------------------- main ------------------------------------

if __name__ == "__main__":
    # Module hyper-params: HawkesLSTM(input_size=process_dim, hidden_size=H)
    process_dim = 4          # D: event-type embedding dim
    hidden = 32              # H
    batch = 4                # B (constant per-step batch size)
    seq_len = 8              # T

    D, H, B, T = process_dim, hidden, batch, seq_len
    key = jax.random.PRNGKey(0)
    ks = jax.random.split(key, 8)

    # Embedding table: nn.Embedding(process_dim + 1, process_dim, padding_idx=process_dim)
    embed = jax.random.normal(ks[0], (D + 1, D), jnp.float32)
    embed = embed.at[D].set(0.0)                      # padding row -> zeros

    # 7 Linear(D+H -> H) gate layers, fused along the output dim:
    #   wx: (D, 7H), wh: (H, 7H), b: (7H,)   gate order:
    #   [input_g, forget_g, output_g, input_target, forget_target, z, decay]
    bound = 1.0 / np.sqrt(D + H)
    wx = jax.random.uniform(ks[1], (D, 7 * H), jnp.float32, -bound, bound)
    wh = jax.random.uniform(ks[2], (H, 7 * H), jnp.float32, -bound, bound)
    b = jax.random.uniform(ks[3], (7 * H,), jnp.float32, -bound, bound)

    # Inputs: event types (incl. possible padding id), inter-event times, init states
    seq_types = jax.random.randint(ks[4], (T, B), 0, D + 1, jnp.int32)
    dt_seq = jax.random.uniform(ks[5], (T, B), jnp.float32, 0.0, 2.0)
    h0 = jnp.zeros((B, H), jnp.float32)
    c0 = jnp.zeros((B, H), jnp.float32)
    ct0 = jnp.zeros((B, H), jnp.float32)

    # Glue: embedding lookup (gather) stays in plain JAX.
    x_seq = embed[seq_types]                          # (T, B, D)

    outs = hawkes_lstm_forward(x_seq, dt_seq, wx, wh, b, h0, c0, ct0)
    outs = jax.block_until_ready(outs)

    refs = hawkes_lstm_ref(x_seq, dt_seq, wx, wh, b, h0, c0, ct0)
    names = ("hiddens_ti", "outputs", "cells", "cell_targets", "decays")
    for name, got, want in zip(names, outs, refs):
        np.testing.assert_allclose(np.asarray(got), np.asarray(want),
                                   rtol=1e-5, atol=1e-5, err_msg=name)

    print("KERNEL_OK")
</pallas_src>

<mosaic_0001>
module attributes {stable_mosaic.version = 11 : i64} {
  func.func @hawkes_lstm_kernel(%arg0: i32, %arg1: memref<8x4x225xf32, #tpu.memory_space<vmem>>, %arg2: memref<32x224xf32, #tpu.memory_space<vmem>>, %arg3: memref<4x32xf32, #tpu.memory_space<vmem>>, %arg4: memref<4x32xf32, #tpu.memory_space<vmem>>, %arg5: memref<4x32xf32, #tpu.memory_space<vmem>>, %arg6: memref<8x4x160xf32, #tpu.memory_space<vmem>>) attributes {dimension_semantics = [#tpu.dimension_semantics<parallel>], iteration_bounds = array<i64: 1>, scalar_prefetch = 0 : i64, scratch_operands = 0 : i64, tpu.core_type = #tpu.core_type<tc>, window_params = [{transform_indices = @transform_0, window_bounds = array<i64: 8, 4, 225>}, {pipeline_mode = #tpu.pipeline_mode<synchronous>, transform_indices = @transform_1, window_bounds = array<i64: 32, 224>}, {transform_indices = @transform_2, window_bounds = array<i64: 4, 32>}, {transform_indices = @transform_3, window_bounds = array<i64: 4, 32>}, {transform_indices = @transform_4, window_bounds = array<i64: 4, 32>}, {transform_indices = @transform_5, window_bounds = array<i64: 8, 4, 160>}]} {
    %c0 = arith.constant 0 : index
    %c0_0 = arith.constant 0 : index
    %0 = vector.load %arg2[%c0, %c0_0] : memref<32x224xf32, #tpu.memory_space<vmem>>, vector<32x224xf32>
    %c0_1 = arith.constant 0 : index
    %c0_2 = arith.constant 0 : index
    %1 = vector.load %arg3[%c0_1, %c0_2] : memref<4x32xf32, #tpu.memory_space<vmem>>, vector<4x32xf32>
    %c0_3 = arith.constant 0 : index
    %c0_4 = arith.constant 0 : index
    %2 = vector.load %arg4[%c0_3, %c0_4] : memref<4x32xf32, #tpu.memory_space<vmem>>, vector<4x32xf32>
    %c0_5 = arith.constant 0 : index
    %c0_6 = arith.constant 0 : index
    %3 = vector.load %arg5[%c0_5, %c0_6] : memref<4x32xf32, #tpu.memory_space<vmem>>, vector<4x32xf32>
    %c0_i32 = arith.constant 0 : i32
    %4 = arith.index_cast %c0_i32 : i32 to index
    %c0_7 = arith.constant 0 : index
    %c0_8 = arith.constant 0 : index
    %5 = vector.load %arg1[%4, %c0_7, %c0_8] : memref<8x4x225xf32, #tpu.memory_space<vmem>>, vector<1x4x225xf32>
    %6 = vector.shape_cast %5 : vector<1x4x225xf32> to vector<4x225xf32>
    %7 = vector.extract_strided_slice %6 {offsets = [0, 0], sizes = [4, 224], strides = [1, 1]} : vector<4x225xf32> to vector<4x224xf32>
    %cst = arith.constant dense<0.000000e+00> : vector<4x224xf32>
    %8 = tpu.matmul %1, %0, %cst {dimension_numbers = #tpu.dot_dimension_numbers<[1], [0], [0], [1], [0, 0, 1, 1], [], []>} : vector<4x32xf32>, vector<32x224xf32>, vector<4x224xf32> -> vector<4x224xf32>
    %9 = arith.addf %7, %8 : vector<4x224xf32>
    %10 = vector.extract_strided_slice %6 {offsets = [0, 224], sizes = [4, 1], strides = [1, 1]} : vector<4x225xf32> to vector<4x1xf32>
    %11 = vector.extract_strided_slice %9 {offsets = [0, 0], sizes = [4, 160], strides = [1, 1]} : vector<4x224xf32> to vector<4x160xf32>
    %12 = arith.negf %11 : vector<4x160xf32>
    %13 = math.exp %12 : vector<4x160xf32>
    %cst_9 = arith.constant 1.000000e+00 : f32
    %14 = vector.broadcast %cst_9 : f32 to vector<4x160xf32>
    %15 = arith.addf %14, %13 : vector<4x160xf32>
    %16 = arith.divf %14, %15 : vector<4x160xf32>
    %17 = vector.extract_strided_slice %9 {offsets = [0, 160], sizes = [4, 32], strides = [1, 1]} : vector<4x224xf32> to vector<4x32xf32>
    %18 = math.tanh %17 : vector<4x32xf32>
    %19 = vector.extract_strided_slice %9 {offsets = [0, 192], sizes = [4, 32], strides = [1, 1]} : vector<4x224xf32> to vector<4x32xf32>
    %cst_10 = arith.constant 1.000000e+01 : f32
    %20 = vector.broadcast %cst_10 : f32 to vector<4x32xf32>
    %21 = arith.mulf %20, %19 : vector<4x32xf32>
    %cst_11 = arith.constant 2.000000e+01 : f32
    %22 = vector.broadcast %cst_11 : f32 to vector<4x32xf32>
    %23 = arith.cmpf ogt, %21, %22 : vector<4x32xf32>
    %cst_12 = arith.constant 2.000000e+01 : f32
    %24 = vector.broadcast %cst_12 : f32 to vector<4x32xf32>
    %25 = arith.minimumf %21, %24 : vector<4x32xf32>
    %26 = math.exp %25 : vector<4x32xf32>
    %27 = math.log1p %26 : vector<4x32xf32>
    %cst_13 = arith.constant 1.000000e+01 : f32
    %28 = vector.broadcast %cst_13 : f32 to vector<4x32xf32>
    %29 = arith.divf %27, %28 : vector<4x32xf32>
    %30 = arith.select %23, %19, %29 : vector<4x32xi1>, vector<4x32xf32>
    %31 = vector.extract_strided_slice %16 {offsets = [0, 0], sizes = [4, 32], strides = [1, 1]} : vector<4x160xf32> to vector<4x32xf32>
    %32 = vector.extract_strided_slice %16 {offsets = [0, 32], sizes = [4, 32], strides = [1, 1]} : vector<4x160xf32> to vector<4x32xf32>
    %33 = vector.extract_strided_slice %16 {offsets = [0, 64], sizes = [4, 32], strides = [1, 1]} : vector<4x160xf32> to vector<4x32xf32>
    %34 = vector.extract_strided_slice %16 {offsets = [0, 96], sizes = [4, 32], strides = [1, 1]} : vector<4x160xf32> to vector<4x32xf32>
    %35 = vector.extract_strided_slice %16 {offsets = [0, 128], sizes = [4, 32], strides = [1, 1]} : vector<4x160xf32> to vector<4x32xf32>
    %36 = arith.mulf %32, %2 : vector<4x32xf32>
    %37 = arith.mulf %31, %18 : vector<4x32xf32>
    %38 = arith.addf %36, %37 : vector<4x32xf32>
    %39 = arith.mulf %35, %3 : vector<4x32xf32>
    %40 = arith.mulf %34, %18 : vector<4x32xf32>
    %41 = arith.addf %39, %40 : vector<4x32xf32>
    %42 = arith.subf %38, %41 : vector<4x32xf32>
    %cst_14 = arith.constant 0.000000e+00 : f32
    %43 = vector.broadcast %cst_14 : f32 to vector<4x32xf32>
    %44 = arith.subf %43, %30 : vector<4x32xf32>
    %45 = vector.broadcast %10 : vector<4x1xf32> to vector<4x32xf32>
    %46 = arith.mulf %44, %45 : vector<4x32xf32>
    %47 = math.exp %46 : vector<4x32xf32>
    %48 = arith.mulf %42, %47 : vector<4x32xf32>
    %49 = arith.addf %41, %48 : vector<4x32xf32>
    %50 = math.tanh %49 : vector<4x32xf32>
    %51 = arith.mulf %33, %50 : vector<4x32xf32>
    %52 = tpu.concatenate %51, %33, %38, %41, %30 in 1 : vector<4x32xf32>, vector<4x32xf32>, vector<4x32xf32>, vector<4x32xf32>, vector<4x32xf32> -> vector<4x160xf32>
    %53 = arith.index_cast %c0_i32 : i32 to index
    %c0_15 = arith.constant 0 : index
    %c0_16 = arith.constant 0 : index
    %54 = vector.load %arg6[%53, %c0_15, %c0_16] : memref<8x4x160xf32, #tpu.memory_space<vmem>>, vector<1x4x160xf32>
    %55 = vector.shape_cast %54 : vector<1x4x160xf32> to vector<4x160xf32>
    %56 = vector.shape_cast %52 : vector<4x160xf32> to vector<1x4x160xf32>
    tpu.vector_store %arg6[%53, %c0_15, %c0_16], %56 {strides = array<i32>} : memref<8x4x160xf32, #tpu.memory_space<vmem>>, vector<1x4x160xf32>,
    %c1_i32 = arith.constant 1 : i32
    %57 = arith.index_cast %c1_i32 : i32 to index
    %c0_17 = arith.constant 0 : index
    %c0_18 = arith.constant 0 : index
    %58 = vector.load %arg1[%57, %c0_17, %c0_18] : memref<8x4x225xf32, #tpu.memory_space<vmem>>, vector<1x4x225xf32>
    %59 = vector.shape_cast %58 : vector<1x4x225xf32> to vector<4x225xf32>
    %60 = vector.extract_strided_slice %59 {offsets = [0, 0], sizes = [4, 224], strides = [1, 1]} : vector<4x225xf32> to vector<4x224xf32>
    %cst_19 = arith.constant dense<0.000000e+00> : vector<4x224xf32>
    %61 = tpu.matmul %51, %0, %cst_19 {dimension_numbers = #tpu.dot_dimension_numbers<[1], [0], [0], [1], [0, 0, 1, 1], [], []>} : vector<4x32xf32>, vector<32x224xf32>, vector<4x224xf32> -> vector<4x224xf32>
    %62 = arith.addf %60, %61 : vector<4x224xf32>
    %63 = vector.extract_strided_slice %59 {offsets = [0, 224], sizes = [4, 1], strides = [1, 1]} : vector<4x225xf32> to vector<4x1xf32>
    %64 = vector.extract_strided_slice %62 {offsets = [0, 0], sizes = [4, 160], strides = [1, 1]} : vector<4x224xf32> to vector<4x160xf32>
    %65 = arith.negf %64 : vector<4x160xf32>
    %66 = math.exp %65 : vector<4x160xf32>
    %cst_20 = arith.constant 1.000000e+00 : f32
    %67 = vector.broadcast %cst_20 : f32 to vector<4x160xf32>
    %68 = arith.addf %67, %66 : vector<4x160xf32>
    %69 = arith.divf %67, %68 : vector<4x160xf32>
    %70 = vector.extract_strided_slice %62 {offsets = [0, 160], sizes = [4, 32], strides = [1, 1]} : vector<4x224xf32> to vector<4x32xf32>
    %71 = math.tanh %70 : vector<4x32xf32>
    %72 = vector.extract_strided_slice %62 {offsets = [0, 192], sizes = [4, 32], strides = [1, 1]} : vector<4x224xf32> to vector<4x32xf32>
    %cst_21 = arith.constant 1.000000e+01 : f32
    %73 = vector.broadcast %cst_21 : f32 to vector<4x32xf32>
    %74 = arith.mulf %73, %72 : vector<4x32xf32>
    %cst_22 = arith.constant 2.000000e+01 : f32
    %75 = vector.broadcast %cst_22 : f32 to vector<4x32xf32>
    %76 = arith.cmpf ogt, %74, %75 : vector<4x32xf32>
    %cst_23 = arith.constant 2.000000e+01 : f32
    %77 = vector.broadcast %cst_23 : f32 to vector<4x32xf32>
    %78 = arith.minimumf %74, %77 : vector<4x32xf32>
    %79 = math.exp %78 : vector<4x32xf32>
    %80 = math.log1p %79 : vector<4x32xf32>
    %cst_24 = arith.constant 1.000000e+01 : f32
    %81 = vector.broadcast %cst_24 : f32 to vector<4x32xf32>
    %82 = arith.divf %80, %81 : vector<4x32xf32>
    %83 = arith.select %76, %72, %82 : vector<4x32xi1>, vector<4x32xf32>
    %84 = vector.extract_strided_slice %69 {offsets = [0, 0], sizes = [4, 32], strides = [1, 1]} : vector<4x160xf32> to vector<4x32xf32>
    %85 = vector.extract_strided_slice %69 {offsets = [0, 32], sizes = [4, 32], strides = [1, 1]} : vector<4x160xf32> to vector<4x32xf32>
    %86 = vector.extract_strided_slice %69 {offsets = [0, 64], sizes = [4, 32], strides = [1, 1]} : vector<4x160xf32> to vector<4x32xf32>
    %87 = vector.extract_strided_slice %69 {offsets = [0, 96], sizes = [4, 32], strides = [1, 1]} : vector<4x160xf32> to vector<4x32xf32>
    %88 = vector.extract_strided_slice %69 {offsets = [0, 128], sizes = [4, 32], strides = [1, 1]} : vector<4x160xf32> to vector<4x32xf32>
    %89 = arith.mulf %85, %49 : vector<4x32xf32>
    %90 = arith.mulf %84, %71 : vector<4x32xf32>
    %91 = arith.addf %89, %90 : vector<4x32xf32>
    %92 = arith.mulf %88, %41 : vector<4x32xf32>
    %93 = arith.mulf %87, %71 : vector<4x32xf32>
    %94 = arith.addf %92, %93 : vector<4x32xf32>
    %95 = arith.subf %91, %94 : vector<4x32xf32>
    %cst_25 = arith.constant 0.000000e+00 : f32
    %96 = vector.broadcast %cst_25 : f32 to vector<4x32xf32>
    %97 = arith.subf %96, %83 : vector<4x32xf32>
    %98 = vector.broadcast %63 : vector<4x1xf32> to vector<4x32xf32>
    %99 = arith.mulf %97, %98 : vector<4x32xf32>
    %100 = math.exp %99 : vector<4x32xf32>
    %101 = arith.mulf %95, %100 : vector<4x32xf32>
    %102 = arith.addf %94, %101 : vector<4x32xf32>
    %103 = math.tanh %102 : vector<4x32xf32>
    %104 = arith.mulf %86, %103 : vector<4x32xf32>
    %105 = tpu.concatenate %104, %86, %91, %94, %83 in 1 : vector<4x32xf32>, vector<4x32xf32>, vector<4x32xf32>, vector<4x32xf32>, vector<4x32xf32> -> vector<4x160xf32>
    %106 = arith.index_cast %c1_i32 : i32 to index
    %c0_26 = arith.constant 0 : index
    %c0_27 = arith.constant 0 : index
    %107 = vector.load %arg6[%106, %c0_26, %c0_27] : memref<8x4x160xf32, #tpu.memory_space<vmem>>, vector<1x4x160xf32>
    %108 = vector.shape_cast %107 : vector<1x4x160xf32> to vector<4x160xf32>
    %109 = vector.shape_cast %105 : vector<4x160xf32> to vector<1x4x160xf32>
    tpu.vector_store %arg6[%106, %c0_26, %c0_27], %109 {strides = array<i32>} : memref<8x4x160xf32, #tpu.memory_space<vmem>>, vector<1x4x160xf32>,
    %c2_i32 = arith.constant 2 : i32
    %110 = arith.index_cast %c2_i32 : i32 to index
    %c0_28 = arith.constant 0 : index
    %c0_29 = arith.constant 0 : index
    %111 = vector.load %arg1[%110, %c0_28, %c0_29] : memref<8x4x225xf32, #tpu.memory_space<vmem>>, vector<1x4x225xf32>
    %112 = vector.shape_cast %111 : vector<1x4x225xf32> to vector<4x225xf32>
    %113 = vector.extract_strided_slice %112 {offsets = [0, 0], sizes = [4, 224], strides = [1, 1]} : vector<4x225xf32> to vector<4x224xf32>
    %cst_30 = arith.constant dense<0.000000e+00> : vector<4x224xf32>
    %114 = tpu.matmul %104, %0, %cst_30 {dimension_numbers = #tpu.dot_dimension_numbers<[1], [0], [0], [1], [0, 0, 1, 1], [], []>} : vector<4x32xf32>, vector<32x224xf32>, vector<4x224xf32> -> vector<4x224xf32>
    %115 = arith.addf %113, %114 : vector<4x224xf32>
    %116 = vector.extract_strided_slice %112 {offsets = [0, 224], sizes = [4, 1], strides = [1, 1]} : vector<4x225xf32> to vector<4x1xf32>
    %117 = vector.extract_strided_slice %115 {offsets = [0, 0], sizes = [4, 160], strides = [1, 1]} : vector<4x224xf32> to vector<4x160xf32>
    %118 = arith.negf %117 : vector<4x160xf32>
    %119 = math.exp %118 : vector<4x160xf32>
    %cst_31 = arith.constant 1.000000e+00 : f32
    %120 = vector.broadcast %cst_31 : f32 to vector<4x160xf32>
    %121 = arith.addf %120, %119 : vector<4x160xf32>
    %122 = arith.divf %120, %121 : vector<4x160xf32>
    %123 = vector.extract_strided_slice %115 {offsets = [0, 160], sizes = [4, 32], strides = [1, 1]} : vector<4x224xf32> to vector<4x32xf32>
    %124 = math.tanh %123 : vector<4x32xf32>
    %125 = vector.extract_strided_slice %115 {offsets = [0, 192], sizes = [4, 32], strides = [1, 1]} : vector<4x224xf32> to vector<4x32xf32>
    %cst_32 = arith.constant 1.000000e+01 : f32
    %126 = vector.broadcast %cst_32 : f32 to vector<4x32xf32>
    %127 = arith.mulf %126, %125 : vector<4x32xf32>
    %cst_33 = arith.constant 2.000000e+01 : f32
    %128 = vector.broadcast %cst_33 : f32 to vector<4x32xf32>
    %129 = arith.cmpf ogt, %127, %128 : vector<4x32xf32>
    %cst_34 = arith.constant 2.000000e+01 : f32
    %130 = vector.broadcast %cst_34 : f32 to vector<4x32xf32>
    %131 = arith.minimumf %127, %130 : vector<4x32xf32>
    %132 = math.exp %131 : vector<4x32xf32>
    %133 = math.log1p %132 : vector<4x32xf32>
    %cst_35 = arith.constant 1.000000e+01 : f32
    %134 = vector.broadcast %cst_35 : f32 to vector<4x32xf32>
    %135 = arith.divf %133, %134 : vector<4x32xf32>
    %136 = arith.select %129, %125, %135 : vector<4x32xi1>, vector<4x32xf32>
    %137 = vector.extract_strided_slice %122 {offsets = [0, 0], sizes = [4, 32], strides = [1, 1]} : vector<4x160xf32> to vector<4x32xf32>
    %138 = vector.extract_strided_slice %122 {offsets = [0, 32], sizes = [4, 32], strides = [1, 1]} : vector<4x160xf32> to vector<4x32xf32>
    %139 = vector.extract_strided_slice %122 {offsets = [0, 64], sizes = [4, 32], strides = [1, 1]} : vector<4x160xf32> to vector<4x32xf32>
    %140 = vector.extract_strided_slice %122 {offsets = [0, 96], sizes = [4, 32], strides = [1, 1]} : vector<4x160xf32> to vector<4x32xf32>
    %141 = vector.extract_strided_slice %122 {offsets = [0, 128], sizes = [4, 32], strides = [1, 1]} : vector<4x160xf32> to vector<4x32xf32>
    %142 = arith.mulf %138, %102 : vector<4x32xf32>
    %143 = arith.mulf %137, %124 : vector<4x32xf32>
    %144 = arith.addf %142, %143 : vector<4x32xf32>
    %145 = arith.mulf %141, %94 : vector<4x32xf32>
    %146 = arith.mulf %140, %124 : vector<4x32xf32>
    %147 = arith.addf %145, %146 : vector<4x32xf32>
    %148 = arith.subf %144, %147 : vector<4x32xf32>
    %cst_36 = arith.constant 0.000000e+00 : f32
    %149 = vector.broadcast %cst_36 : f32 to vector<4x32xf32>
    %150 = arith.subf %149, %136 : vector<4x32xf32>
    %151 = vector.broadcast %116 : vector<4x1xf32> to vector<4x32xf32>
    %152 = arith.mulf %150, %151 : vector<4x32xf32>
    %153 = math.exp %152 : vector<4x32xf32>
    %154 = arith.mulf %148, %153 : vector<4x32xf32>
    %155 = arith.addf %147, %154 : vector<4x32xf32>
    %156 = math.tanh %155 : vector<4x32xf32>
    %157 = arith.mulf %139, %156 : vector<4x32xf32>
    %158 = tpu.concatenate %157, %139, %144, %147, %136 in 1 : vector<4x32xf32>, vector<4x32xf32>, vector<4x32xf32>, vector<4x32xf32>, vector<4x32xf32> -> vector<4x160xf32>
    %159 = arith.index_cast %c2_i32 : i32 to index
    %c0_37 = arith.constant 0 : index
    %c0_38 = arith.constant 0 : index
    %160 = vector.load %arg6[%159, %c0_37, %c0_38] : memref<8x4x160xf32, #tpu.memory_space<vmem>>, vector<1x4x160xf32>
    %161 = vector.shape_cast %160 : vector<1x4x160xf32> to vector<4x160xf32>
    %162 = vector.shape_cast %158 : vector<4x160xf32> to vector<1x4x160xf32>
    tpu.vector_store %arg6[%159, %c0_37, %c0_38], %162 {strides = array<i32>} : memref<8x4x160xf32, #tpu.memory_space<vmem>>, vector<1x4x160xf32>,
    %c3_i32 = arith.constant 3 : i32
    %163 = arith.index_cast %c3_i32 : i32 to index
    %c0_39 = arith.constant 0 : index
    %c0_40 = arith.constant 0 : index
    %164 = vector.load %arg1[%163, %c0_39, %c0_40] : memref<8x4x225xf32, #tpu.memory_space<vmem>>, vector<1x4x225xf32>
    %165 = vector.shape_cast %164 : vector<1x4x225xf32> to vector<4x225xf32>
    %166 = vector.extract_strided_slice %165 {offsets = [0, 0], sizes = [4, 224], strides = [1, 1]} : vector<4x225xf32> to vector<4x224xf32>
    %cst_41 = arith.constant dense<0.000000e+00> : vector<4x224xf32>
    %167 = tpu.matmul %157, %0, %cst_41 {dimension_numbers = #tpu.dot_dimension_numbers<[1], [0], [0], [1], [0, 0, 1, 1], [], []>} : vector<4x32xf32>, vector<32x224xf32>, vector<4x224xf32> -> vector<4x224xf32>
    %168 = arith.addf %166, %167 : vector<4x224xf32>
    %169 = vector.extract_strided_slice %165 {offsets = [0, 224], sizes = [4, 1], strides = [1, 1]} : vector<4x225xf32> to vector<4x1xf32>
    %170 = vector.extract_strided_slice %168 {offsets = [0, 0], sizes = [4, 160], strides = [1, 1]} : vector<4x224xf32> to vector<4x160xf32>
    %171 = arith.negf %170 : vector<4x160xf32>
    %172 = math.exp %171 : vector<4x160xf32>
    %cst_42 = arith.constant 1.000000e+00 : f32
    %173 = vector.broadcast %cst_42 : f32 to vector<4x160xf32>
    %174 = arith.addf %173, %172 : vector<4x160xf32>
    %175 = arith.divf %173, %174 : vector<4x160xf32>
    %176 = vector.extract_strided_slice %168 {offsets = [0, 160], sizes = [4, 32], strides = [1, 1]} : vector<4x224xf32> to vector<4x32xf32>
    %177 = math.tanh %176 : vector<4x32xf32>
    %178 = vector.extract_strided_slice %168 {offsets = [0, 192], sizes = [4, 32], strides = [1, 1]} : vector<4x224xf32> to vector<4x32xf32>
    %cst_43 = arith.constant 1.000000e+01 : f32
    %179 = vector.broadcast %cst_43 : f32 to vector<4x32xf32>
    %180 = arith.mulf %179, %178 : vector<4x32xf32>
    %cst_44 = arith.constant 2.000000e+01 : f32
    %181 = vector.broadcast %cst_44 : f32 to vector<4x32xf32>
    %182 = arith.cmpf ogt, %180, %181 : vector<4x32xf32>
    %cst_45 = arith.constant 2.000000e+01 : f32
    %183 = vector.broadcast %cst_45 : f32 to vector<4x32xf32>
    %184 = arith.minimumf %180, %183 : vector<4x32xf32>
    %185 = math.exp %184 : vector<4x32xf32>
    %186 = math.log1p %185 : vector<4x32xf32>
    %cst_46 = arith.constant 1.000000e+01 : f32
    %187 = vector.broadcast %cst_46 : f32 to vector<4x32xf32>
    %188 = arith.divf %186, %187 : vector<4x32xf32>
    %189 = arith.select %182, %178, %188 : vector<4x32xi1>, vector<4x32xf32>
    %190 = vector.extract_strided_slice %175 {offsets = [0, 0], sizes = [4, 32], strides = [1, 1]} : vector<4x160xf32> to vector<4x32xf32>
    %191 = vector.extract_strided_slice %175 {offsets = [0, 32], sizes = [4, 32], strides = [1, 1]} : vector<4x160xf32> to vector<4x32xf32>
    %192 = vector.extract_strided_slice %175 {offsets = [0, 64], sizes = [4, 32], strides = [1, 1]} : vector<4x160xf32> to vector<4x32xf32>
    %193 = vector.extract_strided_slice %175 {offsets = [0, 96], sizes = [4, 32], strides = [1, 1]} : vector<4x160xf32> to vector<4x32xf32>
    %194 = vector.extract_strided_slice %175 {offsets = [0, 128], sizes = [4, 32], strides = [1, 1]} : vector<4x160xf32> to vector<4x32xf32>
    %195 = arith.mulf %191, %155 : vector<4x32xf32>
    %196 = arith.mulf %190, %177 : vector<4x32xf32>
    %197 = arith.addf %195, %196 : vector<4x32xf32>
    %198 = arith.mulf %194, %147 : vector<4x32xf32>
    %199 = arith.mulf %193, %177 : vector<4x32xf32>
    %200 = arith.addf %198, %199 : vector<4x32xf32>
    %201 = arith.subf %197, %200 : vector<4x32xf32>
    %cst_47 = arith.constant 0.000000e+00 : f32
    %202 = vector.broadcast %cst_47 : f32 to vector<4x32xf32>
    %203 = arith.subf %202, %189 : vector<4x32xf32>
    %204 = vector.broadcast %169 : vector<4x1xf32> to vector<4x32xf32>
    %205 = arith.mulf %203, %204 : vector<4x32xf32>
    %206 = math.exp %205 : vector<4x32xf32>
    %207 = arith.mulf %201, %206 : vector<4x32xf32>
    %208 = arith.addf %200, %207 : vector<4x32xf32>
    %209 = math.tanh %208 : vector<4x32xf32>
    %210 = arith.mulf %192, %209 : vector<4x32xf32>
    %211 = tpu.concatenate %210, %192, %197, %200, %189 in 1 : vector<4x32xf32>, vector<4x32xf32>, vector<4x32xf32>, vector<4x32xf32>, vector<4x32xf32> -> vector<4x160xf32>
    %212 = arith.index_cast %c3_i32 : i32 to index
    %c0_48 = arith.constant 0 : index
    %c0_49 = arith.constant 0 : index
    %213 = vector.load %arg6[%212, %c0_48, %c0_49] : memref<8x4x160xf32, #tpu.memory_space<vmem>>, vector<1x4x160xf32>
    %214 = vector.shape_cast %213 : vector<1x4x160xf32> to vector<4x160xf32>
    %215 = vector.shape_cast %211 : vector<4x160xf32> to vector<1x4x160xf32>
    tpu.vector_store %arg6[%212, %c0_48, %c0_49], %215 {strides = array<i32>} : memref<8x4x160xf32, #tpu.memory_space<vmem>>, vector<1x4x160xf32>,
    %c4_i32 = arith.constant 4 : i32
    %216 = arith.index_cast %c4_i32 : i32 to index
    %c0_50 = arith.constant 0 : index
    %c0_51 = arith.constant 0 : index
    %217 = vector.load %arg1[%216, %c0_50, %c0_51] : memref<8x4x225xf32, #tpu.memory_space<vmem>>, vector<1x4x225xf32>
    %218 = vector.shape_cast %217 : vector<1x4x225xf32> to vector<4x225xf32>
    %219 = vector.extract_strided_slice %218 {offsets = [0, 0], sizes = [4, 224], strides = [1, 1]} : vector<4x225xf32> to vector<4x224xf32>
    %cst_52 = arith.constant dense<0.000000e+00> : vector<4x224xf32>
    %220 = tpu.matmul %210, %0, %cst_52 {dimension_numbers = #tpu.dot_dimension_numbers<[1], [0], [0], [1], [0, 0, 1, 1], [], []>} : vector<4x32xf32>, vector<32x224xf32>, vector<4x224xf32> -> vector<4x224xf32>
    %221 = arith.addf %219, %220 : vector<4x224xf32>
    %222 = vector.extract_strided_slice %218 {offsets = [0, 224], sizes = [4, 1], strides = [1, 1]} : vector<4x225xf32> to vector<4x1xf32>
    %223 = vector.extract_strided_slice %221 {offsets = [0, 0], sizes = [4, 160], strides = [1, 1]} : vector<4x224xf32> to vector<4x160xf32>
    %224 = arith.negf %223 : vector<4x160xf32>
    %225 = math.exp %224 : vector<4x160xf32>
    %cst_53 = arith.constant 1.000000e+00 : f32
    %226 = vector.broadcast %cst_53 : f32 to vector<4x160xf32>
    %227 = arith.addf %226, %225 : vector<4x160xf32>
    %228 = arith.divf %226, %227 : vector<4x160xf32>
    %229 = vector.extract_strided_slice %221 {offsets = [0, 160], sizes = [4, 32], strides = [1, 1]} : vector<4x224xf32> to vector<4x32xf32>
    %230 = math.tanh %229 : vector<4x32xf32>
    %231 = vector.extract_strided_slice %221 {offsets = [0, 192], sizes = [4, 32], strides = [1, 1]} : vector<4x224xf32> to vector<4x32xf32>
    %cst_54 = arith.constant 1.000000e+01 : f32
    %232 = vector.broadcast %cst_54 : f32 to vector<4x32xf32>
    %233 = arith.mulf %232, %231 : vector<4x32xf32>
    %cst_55 = arith.constant 2.000000e+01 : f32
    %234 = vector.broadcast %cst_55 : f32 to vector<4x32xf32>
    %235 = arith.cmpf ogt, %233, %234 : vector<4x32xf32>
    %cst_56 = arith.constant 2.000000e+01 : f32
    %236 = vector.broadcast %cst_56 : f32 to vector<4x32xf32>
    %237 = arith.minimumf %233, %236 : vector<4x32xf32>
    %238 = math.exp %237 : vector<4x32xf32>
    %239 = math.log1p %238 : vector<4x32xf32>
    %cst_57 = arith.constant 1.000000e+01 : f32
    %240 = vector.broadcast %cst_57 : f32 to vector<4x32xf32>
    %241 = arith.divf %239, %240 : vector<4x32xf32>
    %242 = arith.select %235, %231, %241 : vector<4x32xi1>, vector<4x32xf32>
    %243 = vector.extract_strided_slice %228 {offsets = [0, 0], sizes = [4, 32], strides = [1, 1]} : vector<4x160xf32> to vector<4x32xf32>
    %244 = vector.extract_strided_slice %228 {offsets = [0, 32], sizes = [4, 32], strides = [1, 1]} : vector<4x160xf32> to vector<4x32xf32>
    %245 = vector.extract_strided_slice %228 {offsets = [0, 64], sizes = [4, 32], strides = [1, 1]} : vector<4x160xf32> to vector<4x32xf32>
    %246 = vector.extract_strided_slice %228 {offsets = [0, 96], sizes = [4, 32], strides = [1, 1]} : vector<4x160xf32> to vector<4x32xf32>
    %247 = vector.extract_strided_slice %228 {offsets = [0, 128], sizes = [4, 32], strides = [1, 1]} : vector<4x160xf32> to vector<4x32xf32>
    %248 = arith.mulf %244, %208 : vector<4x32xf32>
    %249 = arith.mulf %243, %230 : vector<4x32xf32>
    %250 = arith.addf %248, %249 : vector<4x32xf32>
    %251 = arith.mulf %247, %200 : vector<4x32xf32>
    %252 = arith.mulf %246, %230 : vector<4x32xf32>
    %253 = arith.addf %251, %252 : vector<4x32xf32>
    %254 = arith.subf %250, %253 : vector<4x32xf32>
    %cst_58 = arith.constant 0.000000e+00 : f32
    %255 = vector.broadcast %cst_58 : f32 to vector<4x32xf32>
    %256 = arith.subf %255, %242 : vector<4x32xf32>
    %257 = vector.broadcast %222 : vector<4x1xf32> to vector<4x32xf32>
    %258 = arith.mulf %256, %257 : vector<4x32xf32>
    %259 = math.exp %258 : vector<4x32xf32>
    %260 = arith.mulf %254, %259 : vector<4x32xf32>
    %261 = arith.addf %253, %260 : vector<4x32xf32>
    %262 = math.tanh %261 : vector<4x32xf32>
    %263 = arith.mulf %245, %262 : vector<4x32xf32>
    %264 = tpu.concatenate %263, %245, %250, %253, %242 in 1 : vector<4x32xf32>, vector<4x32xf32>, vector<4x32xf32>, vector<4x32xf32>, vector<4x32xf32> -> vector<4x160xf32>
    %265 = arith.index_cast %c4_i32 : i32 to index
    %c0_59 = arith.constant 0 : index
    %c0_60 = arith.constant 0 : index
    %266 = vector.load %arg6[%265, %c0_59, %c0_60] : memref<8x4x160xf32, #tpu.memory_space<vmem>>, vector<1x4x160xf32>
    %267 = vector.shape_cast %266 : vector<1x4x160xf32> to vector<4x160xf32>
    %268 = vector.shape_cast %264 : vector<4x160xf32> to vector<1x4x160xf32>
    tpu.vector_store %arg6[%265, %c0_59, %c0_60], %268 {strides = array<i32>} : memref<8x4x160xf32, #tpu.memory_space<vmem>>, vector<1x4x160xf32>,
    %c5_i32 = arith.constant 5 : i32
    %269 = arith.index_cast %c5_i32 : i32 to index
    %c0_61 = arith.constant 0 : index
    %c0_62 = arith.constant 0 : index
    %270 = vector.load %arg1[%269, %c0_61, %c0_62] : memref<8x4x225xf32, #tpu.memory_space<vmem>>, vector<1x4x225xf32>
    %271 = vector.shape_cast %270 : vector<1x4x225xf32> to vector<4x225xf32>
    %272 = vector.extract_strided_slice %271 {offsets = [0, 0], sizes = [4, 224], strides = [1, 1]} : vector<4x225xf32> to vector<4x224xf32>
    %cst_63 = arith.constant dense<0.000000e+00> : vector<4x224xf32>
    %273 = tpu.matmul %263, %0, %cst_63 {dimension_numbers = #tpu.dot_dimension_numbers<[1], [0], [0], [1], [0, 0, 1, 1], [], []>} : vector<4x32xf32>, vector<32x224xf32>, vector<4x224xf32> -> vector<4x224xf32>
    %274 = arith.addf %272, %273 : vector<4x224xf32>
    %275 = vector.extract_strided_slice %271 {offsets = [0, 224], sizes = [4, 1], strides = [1, 1]} : vector<4x225xf32> to vector<4x1xf32>
    %276 = vector.extract_strided_slice %274 {offsets = [0, 0], sizes = [4, 160], strides = [1, 1]} : vector<4x224xf32> to vector<4x160xf32>
    %277 = arith.negf %276 : vector<4x160xf32>
    %278 = math.exp %277 : vector<4x160xf32>
    %cst_64 = arith.constant 1.000000e+00 : f32
    %279 = vector.broadcast %cst_64 : f32 to vector<4x160xf32>
    %280 = arith.addf %279, %278 : vector<4x160xf32>
    %281 = arith.divf %279, %280 : vector<4x160xf32>
    %282 = vector.extract_strided_slice %274 {offsets = [0, 160], sizes = [4, 32], strides = [1, 1]} : vector<4x224xf32> to vector<4x32xf32>
    %283 = math.tanh %282 : vector<4x32xf32>
    %284 = vector.extract_strided_slice %274 {offsets = [0, 192], sizes = [4, 32], strides = [1, 1]} : vector<4x224xf32> to vector<4x32xf32>
    %cst_65 = arith.constant 1.000000e+01 : f32
    %285 = vector.broadcast %cst_65 : f32 to vector<4x32xf32>
    %286 = arith.mulf %285, %284 : vector<4x32xf32>
    %cst_66 = arith.constant 2.000000e+01 : f32
    %287 = vector.broadcast %cst_66 : f32 to vector<4x32xf32>
    %288 = arith.cmpf ogt, %286, %287 : vector<4x32xf32>
    %cst_67 = arith.constant 2.000000e+01 : f32
    %289 = vector.broadcast %cst_67 : f32 to vector<4x32xf32>
    %290 = arith.minimumf %286, %289 : vector<4x32xf32>
    %291 = math.exp %290 : vector<4x32xf32>
    %292 = math.log1p %291 : vector<4x32xf32>
    %cst_68 = arith.constant 1.000000e+01 : f32
    %293 = vector.broadcast %cst_68 : f32 to vector<4x32xf32>
    %294 = arith.divf %292, %293 : vector<4x32xf32>
    %295 = arith.select %288, %284, %294 : vector<4x32xi1>, vector<4x32xf32>
    %296 = vector.extract_strided_slice %281 {offsets = [0, 0], sizes = [4, 32], strides = [1, 1]} : vector<4x160xf32> to vector<4x32xf32>
    %297 = vector.extract_strided_slice %281 {offsets = [0, 32], sizes = [4, 32], strides = [1, 1]} : vector<4x160xf32> to vector<4x32xf32>
    %298 = vector.extract_strided_slice %281 {offsets = [0, 64], sizes = [4, 32], strides = [1, 1]} : vector<4x160xf32> to vector<4x32xf32>
    %299 = vector.extract_strided_slice %281 {offsets = [0, 96], sizes = [4, 32], strides = [1, 1]} : vector<4x160xf32> to vector<4x32xf32>
    %300 = vector.extract_strided_slice %281 {offsets = [0, 128], sizes = [4, 32], strides = [1, 1]} : vector<4x160xf32> to vector<4x32xf32>
    %301 = arith.mulf %297, %261 : vector<4x32xf32>
    %302 = arith.mulf %296, %283 : vector<4x32xf32>
    %303 = arith.addf %301, %302 : vector<4x32xf32>
    %304 = arith.mulf %300, %253 : vector<4x32xf32>
    %305 = arith.mulf %299, %283 : vector<4x32xf32>
    %306 = arith.addf %304, %305 : vector<4x32xf32>
    %307 = arith.subf %303, %306 : vector<4x32xf32>
    %cst_69 = arith.constant 0.000000e+00 : f32
    %308 = vector.broadcast %cst_69 : f32 to vector<4x32xf32>
    %309 = arith.subf %308, %295 : vector<4x32xf32>
    %310 = vector.broadcast %275 : vector<4x1xf32> to vector<4x32xf32>
    %311 = arith.mulf %309, %310 : vector<4x32xf32>
    %312 = math.exp %311 : vector<4x32xf32>
    %313 = arith.mulf %307, %312 : vector<4x32xf32>
    %314 = arith.addf %306, %313 : vector<4x32xf32>
    %315 = math.tanh %314 : vector<4x32xf32>
    %316 = arith.mulf %298, %315 : vector<4x32xf32>
    %317 = tpu.concatenate %316, %298, %303, %306, %295 in 1 : vector<4x32xf32>, vector<4x32xf32>, vector<4x32xf32>, vector<4x32xf32>, vector<4x32xf32> -> vector<4x160xf32>
    %318 = arith.index_cast %c5_i32 : i32 to index
    %c0_70 = arith.constant 0 : index
    %c0_71 = arith.constant 0 : index
    %319 = vector.load %arg6[%318, %c0_70, %c0_71] : memref<8x4x160xf32, #tpu.memory_space<vmem>>, vector<1x4x160xf32>
    %320 = vector.shape_cast %319 : vector<1x4x160xf32> to vector<4x160xf32>
    %321 = vector.shape_cast %317 : vector<4x160xf32> to vector<1x4x160xf32>
    tpu.vector_store %arg6[%318, %c0_70, %c0_71], %321 {strides = array<i32>} : memref<8x4x160xf32, #tpu.memory_space<vmem>>, vector<1x4x160xf32>,
    %c6_i32 = arith.constant 6 : i32
    %322 = arith.index_cast %c6_i32 : i32 to index
    %c0_72 = arith.constant 0 : index
    %c0_73 = arith.constant 0 : index
    %323 = vector.load %arg1[%322, %c0_72, %c0_73] : memref<8x4x225xf32, #tpu.memory_space<vmem>>, vector<1x4x225xf32>
    %324 = vector.shape_cast %323 : vector<1x4x225xf32> to vector<4x225xf32>
    %325 = vector.extract_strided_slice %324 {offsets = [0, 0], sizes = [4, 224], strides = [1, 1]} : vector<4x225xf32> to vector<4x224xf32>
    %cst_74 = arith.constant dense<0.000000e+00> : vector<4x224xf32>
    %326 = tpu.matmul %316, %0, %cst_74 {dimension_numbers = #tpu.dot_dimension_numbers<[1], [0], [0], [1], [0, 0, 1, 1], [], []>} : vector<4x32xf32>, vector<32x224xf32>, vector<4x224xf32> -> vector<4x224xf32>
    %327 = arith.addf %325, %326 : vector<4x224xf32>
    %328 = vector.extract_strided_slice %324 {offsets = [0, 224], sizes = [4, 1], strides = [1, 1]} : vector<4x225xf32> to vector<4x1xf32>
    %329 = vector.extract_strided_slice %327 {offsets = [0, 0], sizes = [4, 160], strides = [1, 1]} : vector<4x224xf32> to vector<4x160xf32>
    %330 = arith.negf %329 : vector<4x160xf32>
    %331 = math.exp %330 : vector<4x160xf32>
    %cst_75 = arith.constant 1.000000e+00 : f32
    %332 = vector.broadcast %cst_75 : f32 to vector<4x160xf32>
    %333 = arith.addf %332, %331 : vector<4x160xf32>
    %334 = arith.divf %332, %333 : vector<4x160xf32>
    %335 = vector.extract_strided_slice %327 {offsets = [0, 160], sizes = [4, 32], strides = [1, 1]} : vector<4x224xf32> to vector<4x32xf32>
    %336 = math.tanh %335 : vector<4x32xf32>
    %337 = vector.extract_strided_slice %327 {offsets = [0, 192], sizes = [4, 32], strides = [1, 1]} : vector<4x224xf32> to vector<4x32xf32>
    %cst_76 = arith.constant 1.000000e+01 : f32
    %338 = vector.broadcast %cst_76 : f32 to vector<4x32xf32>
    %339 = arith.mulf %338, %337 : vector<4x32xf32>
    %cst_77 = arith.constant 2.000000e+01 : f32
    %340 = vector.broadcast %cst_77 : f32 to vector<4x32xf32>
    %341 = arith.cmpf ogt, %339, %340 : vector<4x32xf32>
    %cst_78 = arith.constant 2.000000e+01 : f32
    %342 = vector.broadcast %cst_78 : f32 to vector<4x32xf32>
    %343 = arith.minimumf %339, %342 : vector<4x32xf32>
    %344 = math.exp %343 : vector<4x32xf32>
    %345 = math.log1p %344 : vector<4x32xf32>
    %cst_79 = arith.constant 1.000000e+01 : f32
    %346 = vector.broadcast %cst_79 : f32 to vector<4x32xf32>
    %347 = arith.divf %345, %346 : vector<4x32xf32>
    %348 = arith.select %341, %337, %347 : vector<4x32xi1>, vector<4x32xf32>
    %349 = vector.extract_strided_slice %334 {offsets = [0, 0], sizes = [4, 32], strides = [1, 1]} : vector<4x160xf32> to vector<4x32xf32>
    %350 = vector.extract_strided_slice %334 {offsets = [0, 32], sizes = [4, 32], strides = [1, 1]} : vector<4x160xf32> to vector<4x32xf32>
    %351 = vector.extract_strided_slice %334 {offsets = [0, 64], sizes = [4, 32], strides = [1, 1]} : vector<4x160xf32> to vector<4x32xf32>
    %352 = vector.extract_strided_slice %334 {offsets = [0, 96], sizes = [4, 32], strides = [1, 1]} : vector<4x160xf32> to vector<4x32xf32>
    %353 = vector.extract_strided_slice %334 {offsets = [0, 128], sizes = [4, 32], strides = [1, 1]} : vector<4x160xf32> to vector<4x32xf32>
    %354 = arith.mulf %350, %314 : vector<4x32xf32>
    %355 = arith.mulf %349, %336 : vector<4x32xf32>
    %356 = arith.addf %354, %355 : vector<4x32xf32>
    %357 = arith.mulf %353, %306 : vector<4x32xf32>
    %358 = arith.mulf %352, %336 : vector<4x32xf32>
    %359 = arith.addf %357, %358 : vector<4x32xf32>
    %360 = arith.subf %356, %359 : vector<4x32xf32>
    %cst_80 = arith.constant 0.000000e+00 : f32
    %361 = vector.broadcast %cst_80 : f32 to vector<4x32xf32>
    %362 = arith.subf %361, %348 : vector<4x32xf32>
    %363 = vector.broadcast %328 : vector<4x1xf32> to vector<4x32xf32>
    %364 = arith.mulf %362, %363 : vector<4x32xf32>
    %365 = math.exp %364 : vector<4x32xf32>
    %366 = arith.mulf %360, %365 : vector<4x32xf32>
    %367 = arith.addf %359, %366 : vector<4x32xf32>
    %368 = math.tanh %367 : vector<4x32xf32>
    %369 = arith.mulf %351, %368 : vector<4x32xf32>
    %370 = tpu.concatenate %369, %351, %356, %359, %348 in 1 : vector<4x32xf32>, vector<4x32xf32>, vector<4x32xf32>, vector<4x32xf32>, vector<4x32xf32> -> vector<4x160xf32>
    %371 = arith.index_cast %c6_i32 : i32 to index
    %c0_81 = arith.constant 0 : index
    %c0_82 = arith.constant 0 : index
    %372 = vector.load %arg6[%371, %c0_81, %c0_82] : memref<8x4x160xf32, #tpu.memory_space<vmem>>, vector<1x4x160xf32>
    %373 = vector.shape_cast %372 : vector<1x4x160xf32> to vector<4x160xf32>
    %374 = vector.shape_cast %370 : vector<4x160xf32> to vector<1x4x160xf32>
    tpu.vector_store %arg6[%371, %c0_81, %c0_82], %374 {strides = array<i32>} : memref<8x4x160xf32, #tpu.memory_space<vmem>>, vector<1x4x160xf32>,
    %c7_i32 = arith.constant 7 : i32
    %375 = arith.index_cast %c7_i32 : i32 to index
    %c0_83 = arith.constant 0 : index
    %c0_84 = arith.constant 0 : index
    %376 = vector.load %arg1[%375, %c0_83, %c0_84] : memref<8x4x225xf32, #tpu.memory_space<vmem>>, vector<1x4x225xf32>
    %377 = vector.shape_cast %376 : vector<1x4x225xf32> to vector<4x225xf32>
    %378 = vector.extract_strided_slice %377 {offsets = [0, 0], sizes = [4, 224], strides = [1, 1]} : vector<4x225xf32> to vector<4x224xf32>
    %cst_85 = arith.constant dense<0.000000e+00> : vector<4x224xf32>
    %379 = tpu.matmul %369, %0, %cst_85 {dimension_numbers = #tpu.dot_dimension_numbers<[1], [0], [0], [1], [0, 0, 1, 1], [], []>} : vector<4x32xf32>, vector<32x224xf32>, vector<4x224xf32> -> vector<4x224xf32>
    %380 = arith.addf %378, %379 : vector<4x224xf32>
    %381 = vector.extract_strided_slice %377 {offsets = [0, 224], sizes = [4, 1], strides = [1, 1]} : vector<4x225xf32> to vector<4x1xf32>
    %382 = vector.extract_strided_slice %380 {offsets = [0, 0], sizes = [4, 160], strides = [1, 1]} : vector<4x224xf32> to vector<4x160xf32>
    %383 = arith.negf %382 : vector<4x160xf32>
    %384 = math.exp %383 : vector<4x160xf32>
    %cst_86 = arith.constant 1.000000e+00 : f32
    %385 = vector.broadcast %cst_86 : f32 to vector<4x160xf32>
    %386 = arith.addf %385, %384 : vector<4x160xf32>
    %387 = arith.divf %385, %386 : vector<4x160xf32>
    %388 = vector.extract_strided_slice %380 {offsets = [0, 160], sizes = [4, 32], strides = [1, 1]} : vector<4x224xf32> to vector<4x32xf32>
    %389 = math.tanh %388 : vector<4x32xf32>
    %390 = vector.extract_strided_slice %380 {offsets = [0, 192], sizes = [4, 32], strides = [1, 1]} : vector<4x224xf32> to vector<4x32xf32>
    %cst_87 = arith.constant 1.000000e+01 : f32
    %391 = vector.broadcast %cst_87 : f32 to vector<4x32xf32>
    %392 = arith.mulf %391, %390 : vector<4x32xf32>
    %cst_88 = arith.constant 2.000000e+01 : f32
    %393 = vector.broadcast %cst_88 : f32 to vector<4x32xf32>
    %394 = arith.cmpf ogt, %392, %393 : vector<4x32xf32>
    %cst_89 = arith.constant 2.000000e+01 : f32
    %395 = vector.broadcast %cst_89 : f32 to vector<4x32xf32>
    %396 = arith.minimumf %392, %395 : vector<4x32xf32>
    %397 = math.exp %396 : vector<4x32xf32>
    %398 = math.log1p %397 : vector<4x32xf32>
    %cst_90 = arith.constant 1.000000e+01 : f32
    %399 = vector.broadcast %cst_90 : f32 to vector<4x32xf32>
    %400 = arith.divf %398, %399 : vector<4x32xf32>
    %401 = arith.select %394, %390, %400 : vector<4x32xi1>, vector<4x32xf32>
    %402 = vector.extract_strided_slice %387 {offsets = [0, 0], sizes = [4, 32], strides = [1, 1]} : vector<4x160xf32> to vector<4x32xf32>
    %403 = vector.extract_strided_slice %387 {offsets = [0, 32], sizes = [4, 32], strides = [1, 1]} : vector<4x160xf32> to vector<4x32xf32>
    %404 = vector.extract_strided_slice %387 {offsets = [0, 64], sizes = [4, 32], strides = [1, 1]} : vector<4x160xf32> to vector<4x32xf32>
    %405 = vector.extract_strided_slice %387 {offsets = [0, 96], sizes = [4, 32], strides = [1, 1]} : vector<4x160xf32> to vector<4x32xf32>
    %406 = vector.extract_strided_slice %387 {offsets = [0, 128], sizes = [4, 32], strides = [1, 1]} : vector<4x160xf32> to vector<4x32xf32>
    %407 = arith.mulf %403, %367 : vector<4x32xf32>
    %408 = arith.mulf %402, %389 : vector<4x32xf32>
    %409 = arith.addf %407, %408 : vector<4x32xf32>
    %410 = arith.mulf %406, %359 : vector<4x32xf32>
    %411 = arith.mulf %405, %389 : vector<4x32xf32>
    %412 = arith.addf %410, %411 : vector<4x32xf32>
    %413 = arith.subf %409, %412 : vector<4x32xf32>
    %cst_91 = arith.constant 0.000000e+00 : f32
    %414 = vector.broadcast %cst_91 : f32 to vector<4x32xf32>
    %415 = arith.subf %414, %401 : vector<4x32xf32>
    %416 = vector.broadcast %381 : vector<4x1xf32> to vector<4x32xf32>
    %417 = arith.mulf %415, %416 : vector<4x32xf32>
    %418 = math.exp %417 : vector<4x32xf32>
    %419 = arith.mulf %413, %418 : vector<4x32xf32>
    %420 = arith.addf %412, %419 : vector<4x32xf32>
    %421 = math.tanh %420 : vector<4x32xf32>
    %422 = arith.mulf %404, %421 : vector<4x32xf32>
    %423 = tpu.concatenate %422, %404, %409, %412, %401 in 1 : vector<4x32xf32>, vector<4x32xf32>, vector<4x32xf32>, vector<4x32xf32>, vector<4x32xf32> -> vector<4x160xf32>
    %424 = arith.index_cast %c7_i32 : i32 to index
    %c0_92 = arith.constant 0 : index
    %c0_93 = arith.constant 0 : index
    %425 = vector.load %arg6[%424, %c0_92, %c0_93] : memref<8x4x160xf32, #tpu.memory_space<vmem>>, vector<1x4x160xf32>
    %426 = vector.shape_cast %425 : vector<1x4x160xf32> to vector<4x160xf32>
    %427 = vector.shape_cast %423 : vector<4x160xf32> to vector<1x4x160xf32>
    tpu.vector_store %arg6[%424, %c0_92, %c0_93], %427 {strides = array<i32>} : memref<8x4x160xf32, #tpu.memory_space<vmem>>, vector<1x4x160xf32>,
    %c8_i32 = arith.constant 8 : i32
    return
  }
  func.func @transform_0(%arg0: i32) -> (i32, i32, i32) {
    %c0_i32 = arith.constant 0 : i32
    %c0_i32_0 = arith.constant 0 : i32
    %c0_i32_1 = arith.constant 0 : i32
    return %c0_i32, %arg0, %c0_i32_0 : i32, i32, i32
  }
  func.func @transform_1(%arg0: i32) -> (i32, i32) {
    %c0_i32 = arith.constant 0 : i32
    %c0_i32_0 = arith.constant 0 : i32
    %c0_i32_1 = arith.constant 0 : i32
    return %c0_i32, %c0_i32_0 : i32, i32
  }
  func.func @transform_2(%arg0: i32) -> (i32, i32) {
    %c0_i32 = arith.constant 0 : i32
    %c0_i32_0 = arith.constant 0 : i32
    return %arg0, %c0_i32 : i32, i32
  }
  func.func @transform_3(%arg0: i32) -> (i32, i32) {
    %c0_i32 = arith.constant 0 : i32
    %c0_i32_0 = arith.constant 0 : i32
    return %arg0, %c0_i32 : i32, i32
  }
  func.func @transform_4(%arg0: i32) -> (i32, i32) {
    %c0_i32 = arith.constant 0 : i32
    %c0_i32_0 = arith.constant 0 : i32
    return %arg0, %c0_i32 : i32, i32
  }
  func.func @transform_5(%arg0: i32) -> (i32, i32, i32) {
    %c0_i32 = arith.constant 0 : i32
    %c0_i32_0 = arith.constant 0 : i32
    %c0_i32_1 = arith.constant 0 : i32
    return %c0_i32, %arg0, %c0_i32_0 : i32, i32, i32
  }
}

</mosaic_0001>

<bundles_post_ra>
// kernel: tpu_custom_call.1
= control target key start
LH: loop header
LB: loop body
LE: loop exit
PB: predicated region body
PF: predicated region fallthrough
CT: control target
= control target key end

     0   :  { %10 = vsyncpa [#allocation3], 0  ;;  %s2454_s0 = inlined_call_operand.hbm [shape: f32[8,4,225], index: 0, kind: input, shape index: {}]   ;;  %s2455_s1 = inlined_call_operand.hbm [shape: f32[32,224], index: 1, kind: input, shape index: {}]   ;;  %s2456_s2 = inlined_call_operand.hbm [shape: f32[4,32], index: 2, kind: input, shape index: {}]   ;;  %s2457_s3 = inlined_call_operand.vmem [shape: f32[4,32], index: 3, kind: input, shape index: {}]   ;;  %s2458_s4 = inlined_call_operand.hbm [shape: f32[4,32], index: 4, kind: input, shape index: {}]   ;;  %s2459_s5 = inlined_call_operand.hbm [shape: f32[8,4,160], index: 5, kind: output, shape index: {}]  }
   0x1   :  { %11 = vsyncpa [#allocation6], 0 }
   0x2   :  { %12 = vsyncpa [#allocation9], 0 }
   0x3   :  { %13 = vsyncpa [#allocation4], 0  ;;  %s1937_s18 = smov [#allocation5]  }
   0x4   :  { %s31_s19 = sshll.u32 %s1937_s18, 4  ;;  %s32_s19 = int_to_ptr.vmem [resolvable:$true] %s31_s19 }
   0x5   :  { %s1837_s20 = scalar_lea.vmem %s32_s19, 1024  ;;  %p1842_p1 = scmp.lt.s32.totalorder %s32_s19, %s32_s19 }
   0x6   :  { %p1838_p0 = scmp.ne.s32.totalorder %s32_s19, %s1837_s20  ;;  %p1843_p2 = scmp.lt.s32.totalorder %s1837_s20, %s1837_s20 }
   0x8   :  { %p1844_p3 = por %p1843_p2, %p1842_p1 }
   0xa   :  { %p1845_p4 = pnand %p1844_p3, %p1838_p0 }
   0xc   :  { %1848 = shalt.err (!%p1845_p4)
}
   0xd   :  { %s1938_s21 = smov 256   ;;  %s1939_s22 = smov 16  }
   0xe   :  { %37 = dma.hbm_to_vmem [thread:$0]  %s2455_s1, 1024, %s32_s19, [#allocation6], %s1938_s21, %s1938_s21, %s1939_s22  }
   0xf   :  { %s1940_s25 = smov [#allocation2]  }
  0x10   :  { %s19_s26 = sshll.u32 %s1940_s25, 4  ;;  %s20_s26 = int_to_ptr.vmem [resolvable:$true] %s19_s26 }
  0x11   :  { %s1857_s27 = scalar_lea.vmem %s20_s26, 1024  ;;  %p1862_p6 = scmp.lt.s32.totalorder %s20_s26, %s20_s26 }
  0x12   :  { %p1858_p5 = scmp.ne.s32.totalorder %s20_s26, %s1857_s27  ;;  %p1863_p7 = scmp.lt.s32.totalorder %s1857_s27, %s1857_s27 }
  0x14   :  { %p1864_p8 = por %p1863_p7, %p1862_p6 }
  0x16   :  { %p1865_p9 = pnand %p1864_p8, %p1858_p5 }
  0x18   :  { %1868 = shalt.err (!%p1865_p9)
}
  0x19   :  { %s1941_s28 = smov 128   ;;  %s1942_s29 = smov 8  }
  0x1a   :  { %25 = dma.hbm_to_vmem [thread:$0]  %s2454_s0, 1024, %s20_s26, [#allocation3], %s1941_s28, %s1941_s28, %s1942_s29  }
  0x1b   :  { %s1943_s1 = smov [#allocation7]   ;;  %s1944_s8 = smov [#allocation8]  }
  0x1c   :  { %s44_s7 = sshll.u32 %s1943_s1, 4  ;;  %s56_s9 = sshll.u32 %s1944_s8, 4  ;;  %s45_s7 = int_to_ptr.vmem [resolvable:$true] %s44_s7  ;;  %s57_s9 = int_to_ptr.vmem [resolvable:$true] %s56_s9 }
  0x1d   :  { %s1877_s10 = scalar_lea.vmem %s45_s7, 64  ;;  %p1882_p11 = scmp.lt.s32.totalorder %s45_s7, %s45_s7 }
  0x1e   :  { %p1878_p10 = scmp.ne.s32.totalorder %s45_s7, %s1877_s10  ;;  %p1883_p12 = scmp.lt.s32.totalorder %s1877_s10, %s1877_s10 }
  0x20   :  { %p1884_p13 = por %p1883_p12, %p1882_p11 }
  0x22   :  { %p1885_p0 = pnand %p1884_p13, %p1878_p10 }
  0x24   :  { %1888 = shalt.err (!%p1885_p0)
}
  0x25   :  { %47 = dma.hbm_to_vmem [thread:$0]  %s2456_s2, 64, %s45_s7, [#allocation6]  }
  0x26   :  { %s1897_s13 = scalar_lea.vmem %s57_s9, 64  ;;  %p1902_p2 = scmp.lt.s32.totalorder %s57_s9, %s57_s9 }
  0x27   :  { %p1898_p1 = scmp.ne.s32.totalorder %s57_s9, %s1897_s13  ;;  %p1903_p3 = scmp.lt.s32.totalorder %s1897_s13, %s1897_s13 }
  0x29   :  { %p1904_p4 = por %p1903_p3, %p1902_p2 }
  0x2b   :  { %p1905_p5 = pnand %p1904_p4, %p1898_p1 }
  0x2d   :  { %1908 = shalt.err (!%p1905_p5)
}
  0x2e   :  { %59 = dma.hbm_to_vmem [thread:$0]  %s2458_s4, 64, %s57_s9, [#allocation9]  }
  0x2f   :  { %1929 = dma.done.wait [#allocation3], 1024  }
  0x30   :  { %1930 = vsyncadd [#allocation3], 4294966272 }
  0x31   :  { %1931 = dma.done.wait [#allocation6], 1088  }
  0x32   :  { %1932 = vsyncadd [#allocation6], 4294966208 }
  0x33   :  { %1933 = dma.done.wait [#allocation9], 64  }
  0x34   :  { %1934 = vsyncadd [#allocation9], 4294967232  ;;  %v1945_v0 = vmov 0.0   ;;  %v1999_v1 = vld [vmem:[#allocation5 + $0x38] sm:$0xff]  ;;  %v2001_v2 = vld [vmem:[#allocation5 + $0x30] sm:$0xff]  ;;  %vm84_vm0 = vcmask 261120   ;;  %v236_v41 = vlaneseq }
  0x35   :  { %152 = vmatprep.mubr.f32.mxu0 %v1945_v0  ;;  %354 = vmatprep.mubr.f32.mxu1 %v1945_v0  ;;  %v2003_v3 = vld [vmem:[#allocation5 + $0x28] sm:$0xff]  ;;  %v2006_v4 = vld [vmem:[#allocation5 + $0x20] sm:$0xff]  ;;  %v2010_v5 = vld [vmem:[#allocation5 + $0x18] sm:$0xff]  ;;  %s1946_s2 = smov 96   ;;  %s1947_s4 = smov 64   ;;  %v1948_v15 = vmov 96  }
  0x36   :  { %112 = vmatprep.subr.mxu0 %v1999_v1  ;;  %314 = vmatprep.subr.mxu1 %v1999_v1  ;;  %v2014_v6 = vld [vmem:[#allocation5 + $0x10] sm:$0xff]  ;;  %v2018_v7 = vld [vmem:[#allocation5 + $0x8] sm:$0xff]  ;;  %v2022_v8 = vld [vmem:[#allocation5] sm:$0xff]  ;;  %s1949_s17 = smov 32   ;;  %v1950_v39 = vmov 1985246804  }
  0x37   :  { %113 = vmatpush1.msra.mxu0 %v2001_v2  ;;  %315 = vmatpush1.msra.mxu1 %v2001_v2  ;;  %v80_v9 = vld [vmem:[#allocation7] sm:$0xf]  ;;  %v234_v40 = vunpack.c.l.s4 %v1950_v39  ;;  %v237_v45 = vshrl.u32 %v236_v41, 7  ;;  %v82_v56 = vld [vmem:[#allocation8] sm:$0xf] }
  0x38   :  { %114 = vmatprep.subr.mxu0 %v2003_v3  ;;  %316 = vmatprep.subr.mxu1 %v2003_v3  ;;  %v83_v11 = vld [vmem:[#allocation2] sm:$0xff] }
  0x39   :  { %115 = vmatpush1.msra.mxu0 %v2006_v4  ;;  %317 = vmatpush1.msra.mxu1 %v2006_v4  ;;  %v81_v19 = vld [vmem:[%s2457_s3] sm:$0xf]  ;;  %v235_v44 = vunpack.c.0.s8 %v234_v40  ;;  %s1951_s3 = smov [#allocation10]  }
  0x3a   :  { %116 = vmatprep.subr.mxu0 %v2010_v5  ;;  %318 = vmatprep.subr.mxu1 %v2010_v5  ;;  %s1670_s18 = sshll.u32 %s1951_s3, 4  ;;  %s1671_s18 = int_to_ptr.vmem [resolvable:$true] %s1670_s18 }
  0x3b   :  { %117 = vmatpush1.msra.mxu0 %v2014_v6  ;;  %319 = vmatpush1.msra.mxu1 %v2014_v6  ;;  %v2056_v47 = vsub.s32 %v235_v44, %v237_v45  ;;  %s1909_s19 = scalar_lea.vmem %s1671_s18, 1024  ;;  %p1914_p7 = scmp.lt.s32.totalorder %s1671_s18, %s1671_s18 }
  0x3c   :  { %118 = vmatprep.subr.mxu0 %v2018_v7  ;;  %320 = vmatprep.subr.mxu1 %v2018_v7  ;;  %p1910_p6 = scmp.ne.s32.totalorder %s1671_s18, %s1909_s19  ;;  %p1915_p8 = scmp.lt.s32.totalorder %s1909_s19, %s1909_s19 }
  0x3d   :  { %119 = vmatpush1.msra.mxu0 %v2022_v8  ;;  %321 = vmatpush1.msra.mxu1 %v2022_v8 }
  0x3e   :  { %1684 = vmatmul.mubr.msk.f32.vlgmr.msra.gmra.mxu0 %vm84_vm0, %v80_v9  ;;  %511 = vmatprep.subr.mxu0 %v1999_v1  ;;  %p1916_p9 = por %p1915_p8, %p1914_p7 }
  0x3f   :  { %512 = vmatpush1.msra.mxu0 %v2001_v2  ;;  %551 = vmatprep.mubr.f32.mxu0 %v1945_v0 }
  0x40   :  { %513 = vmatprep.subr.mxu0 %v2003_v3  ;;  %708 = vmatprep.subr.mxu1 %v1999_v1  ;;  %p1917_p10 = pnand %p1916_p9, %p1910_p6 }
  0x41   :  { %514 = vmatpush1.msra.mxu0 %v2006_v4  ;;  %1715 = vset.pattern.permute.xlu1 %v1948_v15 }
  0x42   :  { %515 = vmatprep.subr.mxu0 %v2010_v5  ;;  %1716 = vset.pattern.permute.xlu0 %v1948_v15 }
  0x43   :  { %516 = vmatpush1.msra.mxu0 %v2014_v6 }
  0x44   :  { %517 = vmatprep.subr.mxu0 %v2018_v7 }
  0x45   :  { %518 = vmatpush1.msra.mxu0 %v2022_v8 }
  0x46   :  { %905 = vmatprep.subr.mxu0 %v1999_v1 }
  0xfe   :  { %v154_v10 = vpop.f32.mrf.mxu0 }
 0x100   :  { %v156_v12 = vpop.f32.mrf.mxu0 }
 0x101   :  { %v161_v13 = vcombine.low %v154_v10, %v156_v12 }
 0x103   :  { %v163_v14 = vadd.f32 %v161_v13, %v83_v11 }
 0x105   :  { %171 = vrot.lane.b32.xlu0 %v163_v14, %s1946_s2  ;;  %v1685_v25 = vmul.f32 -1.442695, %v163_v14 }
 0x109   :  { %176 = vrot.lane.b32.xlu0 %v163_v14, %s1947_s4 }
 0x177   :  { %v172_v16 = vpop.permute.xlu0 %171 }
 0x178   :  { %v173_v17 = vrot.slane %v172_v16, 4 }
 0x17a   :  { %1717 = vtanh.f32 %v173_v17 }
 0x17b   :  { %v177_v20 = vpop.permute.xlu0 %176 }
 0x17c   :  { %v178_v21 = vrot.slane %v177_v20, 4  ;;  %v287_v20 = vld [vmem:[#allocation2 + $0x8] sm:$0xff] }
 0x17e   :  { %v180_v22 = vmul.f32 10.0, %v178_v21 }
 0x180   :  { %v182_v23 = vmin.f32 %v180_v22, 20.0  ;;  %vm181_vm2 = vcmp.gt.f32.partialorder %v180_v22, 20.0 }
 0x182   :  { %v183_v24 = vmul.f32 1.442695, %v182_v23 }
 0x184   :  { %1719 = vpow2.f32 %v183_v24 }
 0x185   :  { %1721 = vpow2.f32 %v1685_v25 }
 0x187   :  { %v1718_v18 = vpop.eup %1717 }
 0x188   :  { %213 = vrot.lane.b32.xlu1 %v1718_v18, %s1946_s2 }
 0x18c   :  { %230 = vperm.xlu1 %1715, %v83_v11  }
 0x190   :  { %198 = vrot.lane.b32.xlu1 %v81_v19, %s1949_s17 }
 0x191   :  { %v1720_v26 = vpop.eup %1719 }
 0x192   :  { %v1722_v27 = vpop.eup %1721  ;;  %v185_v28 = vadd.f32 1.0, %v1720_v26  ;;  %v188_v30 = vmul.f32 -0.5, %v1720_v26  ;;  %v191_v33 = vand.u32 2147483647, %v1720_v26 }
 0x193   :  { %v167_v29 = vadd.f32 1.0, %v1722_v27 }
 0x194   :  { %1723 = vlog2.f32 %v185_v28  ;;  %v189_v32 = vadd.f32 1.0, %v188_v30  ;;  %vm192_vm1 = vcmp.lt.f32.partialorder %v191_v33, 0.0004427343 }
 0x195   :  { %1725 = vrcp.f32 %v167_v29 }
 0x196   :  { %v190_v38 = vmul.f32 %v1720_v26, %v189_v32 }
 0x1a1   :  { %v1724_v31 = vpop.eup %1723 }
 0x1a2   :  { %v2050_v34 = vpop.eup %1725  ;;  %v187_v35 = vmul.f32 0.6931472, %v1724_v31 }
 0x1a3   :  { %v202_v43 = vmul.f32 %v2050_v34, %v1718_v18  ;;  %v209_v55 = vrot.slane %v2050_v34, 4 }
 0x1a4   :  { %v193_v42 = vsel %vm192_vm1, %v190_v38, %v187_v35 }
 0x1a5   :  { %v195_v46 = vmul.f32 0.1, %v193_v42  ;;  %v211_v57 = vmul.f32 %v209_v55, %v82_v56 }
 0x1a7   :  { %v2058_v48 = vsel %vm181_vm2, %v178_v21, %v195_v46  ;;  %vm274_vm2 = vcmask 523264  }
 0x1a8   :  { %v227_v50 = vsub.f32 0.0, %v2058_v48 }
 0x1fa   :  { %v214_v36 = vpop.permute.xlu1 %213 }
 0x1fb   :  { %v216_v37 = vmul.f32 %v2050_v34, %v214_v36 }
 0x1fd   :  { %218 = vrot.lane.b32.xlu0 %v216_v37, %s1949_s17 }
 0x201   :  { %204 = vrot.lane.b32.xlu0 %v202_v43, %s1949_s17 }
 0x207   :  { %v231_v49 = vpop.permute.xlu1 %230 }
 0x208   :  { %v239_v51 = vrot.slane %v231_v49, %v2056_v47 }
 0x20a   :  { %v240_v52 = vmul.f32 %v239_v51, %v227_v50 }
 0x20b   :  { %v199_v60 = vpop.permute.xlu1 %198 }
 0x20c   :  { %v241_v53 = vmul.f32 1.442695, %v240_v52  ;;  %v201_v62 = vmul.f32 %v2050_v34, %v199_v60 }
 0x20e   :  { %1727 = vpow2.f32 %v241_v53 }
 0x21b   :  { %v1728_v54 = vpop.eup %1727 }
 0x21c   :  { %244 = vrot.lane.b32.xlu0 %v1728_v54, %s1949_s17 }
 0x26f   :  { %v219_v58 = vpop.permute.xlu0 %218 }
 0x270   :  { %v2064_v59 = vadd.f32 %v219_v58, %v211_v57 }
 0x272   :  { %223 = vrot.lane.b32.xlu1 %v2064_v59, %s1949_s17 }
 0x273   :  { %v205_v61 = vpop.permute.xlu0 %204 }
 0x274   :  { %v2069_v63 = vadd.f32 %v205_v61, %v201_v62 }
 0x28e   :  { %v245_v11 = vpop.permute.xlu0 %244 }
 0x2e4   :  { %v224_v9 = vpop.permute.xlu1 %223 }
 0x2e5   :  { %v226_v10 = vsub.f32 %v2069_v63, %v224_v9 }
 0x2e7   :  { %v247_v12 = vmul.f32 %v245_v11, %v226_v10 }
 0x2e9   :  { %249 = vrot.lane.b32.xlu1 %v247_v12, %s1946_s2 }
 0x35b   :  { %v250_v13 = vpop.permute.xlu1 %249 }
 0x35c   :  { %v252_v14 = vadd.f32 %v250_v13, %v2064_v59 }
 0x35e   :  { %1729 = vtanh.f32 %v252_v14 }
 0x36b   :  { %v1730_v15 = vpop.eup %1729 }
 0x36c   :  { %255 = vrot.lane.b32.xlu0 %v1730_v15, %s1947_s4 }
 0x3de   :  { %v256_v16 = vpop.permute.xlu0 %255 }
 0x3df   :  { %v258_v17 = vmul.f32 %v2050_v34, %v256_v16 }
 0x3e1   :  { %260 = vrot.lane.b32.xlu1 %v258_v17, %s1947_s4 }
 0x453   :  { %v2077_v18 = vpop.permute.xlu1 %260 }
 0x454   :  { %1686 = vmatmul.mubr.msk.f32.vlgmr.msra.gmra.mxu1 %vm84_vm0, %v2077_v18 }
 0x455   :  { %709 = vmatpush1.msra.mxu1 %v2001_v2  ;;  %748 = vmatprep.mubr.f32.mxu1 %v1945_v0 }
 0x456   :  { %710 = vmatprep.subr.mxu1 %v2003_v3 }
 0x457   :  { %711 = vmatpush1.msra.mxu1 %v2006_v4 }
 0x458   :  { %712 = vmatprep.subr.mxu1 %v2010_v5 }
 0x459   :  { %713 = vmatpush1.msra.mxu1 %v2014_v6 }
 0x45a   :  { %714 = vmatprep.subr.mxu1 %v2018_v7 }
 0x45b   :  { %715 = vmatpush1.msra.mxu1 %v2022_v8 }
 0x45c   :  { %1102 = vmatprep.subr.mxu1 %v1999_v1 }
 0x514   :  { %v356_v19 = vpop.f32.mrf.mxu1 }
 0x516   :  { %v358_v21 = vpop.f32.mrf.mxu1 }
 0x517   :  { %v363_v22 = vcombine.low %v356_v19, %v358_v21 }
 0x519   :  { %v365_v23 = vadd.f32 %v363_v22, %v287_v20 }
 0x51b   :  { %378 = vrot.lane.b32.xlu1 %v365_v23, %s1947_s4  ;;  %373 = vrot.lane.b32.xlu0 %v365_v23, %s1946_s2  ;;  %v1687_v35 = vmul.f32 -1.442695, %v365_v23 }
 0x51f   :  { %431 = vperm.xlu1 %1715, %v287_v20  }
 0x523   :  { %399 = vrot.lane.b32.xlu1 %v252_v14, %s1949_s17 }
 0x58d   :  { %v374_v24 = vpop.permute.xlu0 %373  ;;  %v379_v27 = vpop.permute.xlu1 %378 }
 0x58e   :  { %v375_v25 = vrot.slane %v374_v24, 4  ;;  %v380_v28 = vrot.slane %v379_v27, 4 }
 0x590   :  { %1731 = vtanh.f32 %v375_v25  ;;  %v382_v29 = vmul.f32 10.0, %v380_v28 }
 0x592   :  { %v384_v30 = vmin.f32 %v382_v29, 20.0  ;;  %vm383_vm4 = vcmp.gt.f32.partialorder %v382_v29, 20.0 }
 0x594   :  { %v385_v31 = vmul.f32 1.442695, %v384_v30 }
 0x596   :  { %1733 = vpow2.f32 %v385_v31 }
 0x59a   :  { %v432_v49 = vpop.permute.xlu1 %431 }
 0x59b   :  { %v440_v51 = vrot.slane %v432_v49, %v2056_v47 }
 0x59d   :  { %v1732_v26 = vpop.eup %1731 }
 0x59e   :  { %414 = vrot.lane.b32.xlu0 %v1732_v26, %s1946_s2  ;;  %v400_v10 = vpop.permute.xlu1 %399 }
 0x5a3   :  { %v1734_v32 = vpop.eup %1733 }
 0x5a4   :  { %v387_v33 = vadd.f32 1.0, %v1734_v32  ;;  %v390_v36 = vmul.f32 -0.5, %v1734_v32  ;;  %v393_v39 = vand.u32 2147483647, %v1734_v32 }
 0x5a6   :  { %1735 = vlog2.f32 %v387_v33  ;;  %v391_v38 = vadd.f32 1.0, %v390_v36  ;;  %vm394_vm3 = vcmp.lt.f32.partialorder %v393_v39, 0.0004427343 }
 0x5a7   :  { %1737 = vpow2.f32 %v1687_v35 }
 0x5a8   :  { %v392_v41 = vmul.f32 %v1734_v32, %v391_v38 }
 0x5b3   :  { %v1736_v37 = vpop.eup %1735 }
 0x5b4   :  { %v389_v40 = vmul.f32 0.6931472, %v1736_v37  ;;  %v1738_v44 = vpop.eup %1737 }
 0x5b5   :  { %v369_v46 = vadd.f32 1.0, %v1738_v44 }
 0x5b6   :  { %v395_v42 = vsel %vm394_vm3, %v392_v41, %v389_v40  ;;  %vm276_vm3 = vcmask 785408  }
 0x5b7   :  { %v396_v43 = vmul.f32 0.1, %v395_v42  ;;  %1739 = vrcp.f32 %v369_v46 }
 0x5b9   :  { %v2094_v45 = vsel %vm383_vm4, %v380_v28, %v396_v43  ;;  %vm282_vm4 = vcmask 1043456  }
 0x5ba   :  { %v428_v50 = vsub.f32 0.0, %v2094_v45 }
 0x5bc   :  { %v441_v52 = vmul.f32 %v440_v51, %v428_v50 }
 0x5be   :  { %v442_v53 = vmul.f32 1.442695, %v441_v52 }
 0x5c0   :  { %1741 = vpow2.f32 %v442_v53 }
 0x5c4   :  { %v2098_v54 = vpop.eup %1739 }
 0x5c5   :  { %v403_v57 = vmul.f32 %v2098_v54, %v1732_v26  ;;  %v410_v60 = vrot.slane %v2098_v54, 4  ;;  %v402_v12 = vmul.f32 %v2098_v54, %v400_v10  ;;  %v484_v26 = vld [vmem:[#allocation2 + $0x10] sm:$0xff] }
 0x5c7   :  { %v412_v61 = vmul.f32 %v410_v60, %v2064_v59 }
 0x5cd   :  { %v1742_v58 = vpop.eup %1741 }
 0x610   :  { %v415_v55 = vpop.permute.xlu0 %414 }
 0x611   :  { %v417_v56 = vmul.f32 %v2098_v54, %v415_v55 }
 0x613   :  { %419 = vrot.lane.b32.xlu0 %v417_v56, %s1949_s17 }
 0x617   :  { %405 = vrot.lane.b32.xlu0 %v403_v57, %s1949_s17 }
 0x61b   :  { %445 = vrot.lane.b32.xlu0 %v1742_v58, %s1949_s17 }
 0x685   :  { %v420_v62 = vpop.permute.xlu0 %419 }
 0x686   :  { %v2107_v9 = vadd.f32 %v420_v62, %v412_v61 }
 0x688   :  { %424 = vrot.lane.b32.xlu1 %v2107_v9, %s1949_s17 }
 0x689   :  { %v406_v11 = vpop.permute.xlu0 %405 }
 0x68a   :  { %v2112_v13 = vadd.f32 %v406_v11, %v402_v12 }
 0x68d   :  { %v446_v16 = vpop.permute.xlu0 %445 }
 0x6fa   :  { %v425_v14 = vpop.permute.xlu1 %424 }
 0x6fb   :  { %v427_v15 = vsub.f32 %v2112_v13, %v425_v14 }
 0x6fd   :  { %v448_v17 = vmul.f32 %v446_v16, %v427_v15 }
 0x6ff   :  { %450 = vrot.lane.b32.xlu1 %v448_v17, %s1946_s2 }
 0x771   :  { %v451_v19 = vpop.permute.xlu1 %450 }
 0x772   :  { %v453_v20 = vadd.f32 %v451_v19, %v2107_v9 }
 0x774   :  { %1743 = vtanh.f32 %v453_v20 }
 0x781   :  { %v1744_v21 = vpop.eup %1743 }
 0x782   :  { %456 = vrot.lane.b32.xlu0 %v1744_v21, %s1947_s4 }
 0x7f4   :  { %v457_v22 = vpop.permute.xlu0 %456 }
 0x7f5   :  { %v459_v23 = vmul.f32 %v2098_v54, %v457_v22 }
 0x7f7   :  { %461 = vrot.lane.b32.xlu1 %v459_v23, %s1947_s4 }
 0x869   :  { %v2120_v24 = vpop.permute.xlu1 %461 }
 0x86a   :  { %1688 = vmatmul.mubr.msk.f32.vlgmr.msra.gmra.mxu0 %vm84_vm0, %v2120_v24 }
 0x86b   :  { %906 = vmatpush1.msra.mxu0 %v2001_v2  ;;  %945 = vmatprep.mubr.f32.mxu0 %v1945_v0 }
 0x86c   :  { %907 = vmatprep.subr.mxu0 %v2003_v3 }
 0x86d   :  { %908 = vmatpush1.msra.mxu0 %v2006_v4 }
 0x86e   :  { %909 = vmatprep.subr.mxu0 %v2010_v5 }
 0x86f   :  { %910 = vmatpush1.msra.mxu0 %v2014_v6 }
 0x870   :  { %911 = vmatprep.subr.mxu0 %v2018_v7 }
 0x871   :  { %912 = vmatpush1.msra.mxu0 %v2022_v8 }
 0x872   :  { %1299 = vmatprep.subr.mxu0 %v1999_v1 }
 0x92a   :  { %v553_v25 = vpop.f32.mrf.mxu0 }
 0x92c   :  { %v555_v27 = vpop.f32.mrf.mxu0 }
 0x92d   :  { %v560_v28 = vcombine.low %v553_v25, %v555_v27 }
 0x92f   :  { %v562_v29 = vadd.f32 %v560_v28, %v484_v26 }
 0x931   :  { %575 = vrot.lane.b32.xlu1 %v562_v29, %s1947_s4  ;;  %570 = vrot.lane.b32.xlu0 %v562_v29, %s1946_s2  ;;  %v1689_v41 = vmul.f32 -1.442695, %v562_v29 }
 0x935   :  { %628 = vperm.xlu1 %1715, %v484_v26  }
 0x939   :  { %596 = vrot.lane.b32.xlu1 %v453_v20, %s1949_s17 }
 0x9a3   :  { %v571_v30 = vpop.permute.xlu0 %570  ;;  %v576_v33 = vpop.permute.xlu1 %575 }
 0x9a4   :  { %v572_v31 = vrot.slane %v571_v30, 4  ;;  %v577_v35 = vrot.slane %v576_v33, 4 }
 0x9a6   :  { %1745 = vtanh.f32 %v572_v31  ;;  %v579_v36 = vmul.f32 10.0, %v577_v35 }
 0x9a8   :  { %v581_v37 = vmin.f32 %v579_v36, 20.0  ;;  %vm580_vm6 = vcmp.gt.f32.partialorder %v579_v36, 20.0 }
 0x9aa   :  { %v582_v38 = vmul.f32 1.442695, %v581_v37 }
 0x9ac   :  { %1747 = vpow2.f32 %v582_v38  ;;  %v681_v38 = vld [vmem:[#allocation2 + $0x18] sm:$0xff] }
 0x9b0   :  { %v629_v57 = vpop.permute.xlu1 %628 }
 0x9b1   :  { %v637_v60 = vrot.slane %v629_v57, %v2056_v47 }
 0x9b3   :  { %v1746_v32 = vpop.eup %1745 }
 0x9b4   :  { %611 = vrot.lane.b32.xlu0 %v1746_v32, %s1946_s2  ;;  %v597_v21 = vpop.permute.xlu1 %596 }
 0x9b9   :  { %v1748_v39 = vpop.eup %1747 }
 0x9ba   :  { %v584_v40 = vadd.f32 1.0, %v1748_v39  ;;  %v587_v42 = vmul.f32 -0.5, %v1748_v39  ;;  %v590_v46 = vand.u32 2147483647, %v1748_v39 }
 0x9bc   :  { %1749 = vlog2.f32 %v584_v40  ;;  %v588_v44 = vadd.f32 1.0, %v587_v42  ;;  %vm591_vm5 = vcmp.lt.f32.partialorder %v590_v46, 0.0004427343 }
 0x9bd   :  { %1751 = vpow2.f32 %v1689_v41 }
 0x9be   :  { %v589_v50 = vmul.f32 %v1748_v39, %v588_v44 }
 0x9c9   :  { %v1750_v43 = vpop.eup %1749 }
 0x9ca   :  { %v586_v49 = vmul.f32 0.6931472, %v1750_v43  ;;  %v1752_v53 = vpop.eup %1751 }
 0x9cb   :  { %v566_v56 = vadd.f32 1.0, %v1752_v53 }
 0x9cc   :  { %v592_v51 = vsel %vm591_vm5, %v589_v50, %v586_v49  ;;  %vm283_vm5 = vcmask 261124  }
 0x9cd   :  { %v593_v52 = vmul.f32 0.1, %v592_v51  ;;  %1753 = vrcp.f32 %v566_v56 }
 0x9cf   :  { %v2137_v55 = vsel %vm580_vm6, %v577_v35, %v593_v52  ;;  %vm2390_vm6 = vmor %vm283_vm5, %vm282_vm4 }
 0x9d0   :  { %v625_v58 = vsub.f32 0.0, %v2137_v55 }
 0x9d2   :  { %v638_v61 = vmul.f32 %v637_v60, %v625_v58 }
 0x9d4   :  { %v639_v62 = vmul.f32 1.442695, %v638_v61 }
 0x9d6   :  { %1755 = vpow2.f32 %v639_v62 }
 0x9da   :  { %v2141_v10 = vpop.eup %1753 }
 0x9db   :  { %v600_v14 = vmul.f32 %v2141_v10, %v1746_v32  ;;  %v607_v16 = vrot.slane %v2141_v10, 4  ;;  %v599_v23 = vmul.f32 %v2141_v10, %v597_v21 }
 0x9dd   :  { %v609_v17 = vmul.f32 %v607_v16, %v2107_v9 }
 0x9e3   :  { %v1756_v15 = vpop.eup %1755 }
 0xa26   :  { %v612_v11 = vpop.permute.xlu0 %611 }
 0xa27   :  { %v614_v12 = vmul.f32 %v2141_v10, %v612_v11 }
 0xa29   :  { %616 = vrot.lane.b32.xlu0 %v614_v12, %s1949_s17 }
 0xa2d   :  { %602 = vrot.lane.b32.xlu0 %v600_v14, %s1949_s17 }
 0xa31   :  { %642 = vrot.lane.b32.xlu0 %v1756_v15, %s1949_s17 }
 0xa9b   :  { %v617_v19 = vpop.permute.xlu0 %616 }
 0xa9c   :  { %v2150_v20 = vadd.f32 %v617_v19, %v609_v17 }
 0xa9e   :  { %621 = vrot.lane.b32.xlu1 %v2150_v20, %s1949_s17 }
 0xa9f   :  { %v603_v22 = vpop.permute.xlu0 %602 }
 0xaa0   :  { %v2155_v25 = vadd.f32 %v603_v22, %v599_v23 }
 0xaa3   :  { %v643_v28 = vpop.permute.xlu0 %642 }
 0xb10   :  { %v622_v26 = vpop.permute.xlu1 %621 }
 0xb11   :  { %v624_v27 = vsub.f32 %v2155_v25, %v622_v26 }
 0xb13   :  { %v645_v29 = vmul.f32 %v643_v28, %v624_v27 }
 0xb15   :  { %647 = vrot.lane.b32.xlu1 %v645_v29, %s1946_s2 }
 0xb87   :  { %v648_v30 = vpop.permute.xlu1 %647 }
 0xb88   :  { %v650_v31 = vadd.f32 %v648_v30, %v2150_v20 }
 0xb8a   :  { %1757 = vtanh.f32 %v650_v31 }
 0xb97   :  { %v1758_v32 = vpop.eup %1757 }
 0xb98   :  { %653 = vrot.lane.b32.xlu0 %v1758_v32, %s1947_s4 }
 0xc0a   :  { %v654_v33 = vpop.permute.xlu0 %653 }
 0xc0b   :  { %v656_v35 = vmul.f32 %v2141_v10, %v654_v33 }
 0xc0d   :  { %658 = vrot.lane.b32.xlu1 %v656_v35, %s1947_s4 }
 0xc7f   :  { %v2163_v36 = vpop.permute.xlu1 %658 }
 0xc80   :  { %1690 = vmatmul.mubr.msk.f32.vlgmr.msra.gmra.mxu1 %vm84_vm0, %v2163_v36 }
 0xc81   :  { %1103 = vmatpush1.msra.mxu1 %v2001_v2  ;;  %1142 = vmatprep.mubr.f32.mxu1 %v1945_v0 }
 0xc82   :  { %1104 = vmatprep.subr.mxu1 %v2003_v3 }
 0xc83   :  { %1105 = vmatpush1.msra.mxu1 %v2006_v4 }
 0xc84   :  { %1106 = vmatprep.subr.mxu1 %v2010_v5 }
 0xc85   :  { %1107 = vmatpush1.msra.mxu1 %v2014_v6 }
 0xc86   :  { %1108 = vmatprep.subr.mxu1 %v2018_v7 }
 0xc87   :  { %1109 = vmatpush1.msra.mxu1 %v2022_v8 }
 0xc88   :  { %1496 = vmatprep.subr.mxu1 %v1999_v1 }
 0xd40   :  { %v750_v37 = vpop.f32.mrf.mxu1 }
 0xd42   :  { %v752_v39 = vpop.f32.mrf.mxu1 }
 0xd43   :  { %v757_v40 = vcombine.low %v750_v37, %v752_v39 }
 0xd45   :  { %v759_v41 = vadd.f32 %v757_v40, %v681_v38 }
 0xd47   :  { %772 = vrot.lane.b32.xlu1 %v759_v41, %s1947_s4  ;;  %767 = vrot.lane.b32.xlu0 %v759_v41, %s1946_s2  ;;  %v1691_v56 = vmul.f32 -1.442695, %v759_v41 }
 0xd4b   :  { %825 = vperm.xlu1 %1715, %v681_v38  }
 0xd4f   :  { %793 = vrot.lane.b32.xlu1 %v650_v31, %s1949_s17 }
 0xdb9   :  { %v768_v42 = vpop.permute.xlu0 %767  ;;  %v773_v46 = vpop.permute.xlu1 %772 }
 0xdba   :  { %v769_v43 = vrot.slane %v768_v42, 4  ;;  %v774_v1 = vrot.slane %v773_v46, 4 }
 0xdbc   :  { %1759 = vtanh.f32 %v769_v43  ;;  %v776_v49 = vmul.f32 10.0, %v774_v1 }
 0xdbe   :  { %v778_v50 = vmin.f32 %v776_v49, 20.0  ;;  %vm777_vm8 = vcmp.gt.f32.partialorder %v776_v49, 20.0 }
 0xdc0   :  { %v779_v51 = vmul.f32 1.442695, %v778_v50 }
 0xdc2   :  { %1761 = vpow2.f32 %v779_v51 }
 0xdc6   :  { %v826_v19 = vpop.permute.xlu1 %825 }
 0xdc7   :  { %v834_v22 = vrot.slane %v826_v19, %v2056_v47 }
 0xdc9   :  { %v1760_v44 = vpop.eup %1759 }
 0xdca   :  { %808 = vrot.lane.b32.xlu0 %v1760_v44, %s1946_s2  ;;  %v794_v38 = vpop.permute.xlu1 %793 }
 0xdcf   :  { %v1762_v52 = vpop.eup %1761 }
 0xdd0   :  { %v781_v53 = vadd.f32 1.0, %v1762_v52  ;;  %v784_v57 = vmul.f32 -0.5, %v1762_v52  ;;  %v787_v61 = vand.u32 2147483647, %v1762_v52 }
 0xdd2   :  { %1763 = vlog2.f32 %v781_v53  ;;  %v785_v60 = vadd.f32 1.0, %v784_v57  ;;  %vm788_vm7 = vcmp.lt.f32.partialorder %v787_v61, 0.0004427343  ;;  %v878_v57 = vld [vmem:[#allocation2 + $0x20] sm:$0xff] }
 0xdd3   :  { %1765 = vpow2.f32 %v1691_v56 }
 0xdd4   :  { %v786_v11 = vmul.f32 %v1762_v52, %v785_v60 }
 0xddf   :  { %v1764_v58 = vpop.eup %1763 }
 0xde0   :  { %v783_v62 = vmul.f32 0.6931472, %v1764_v58  ;;  %v1766_v15 = vpop.eup %1765 }
 0xde1   :  { %v763_v17 = vadd.f32 1.0, %v1766_v15 }
 0xde2   :  { %v789_v12 = vsel %vm788_vm7, %v786_v11, %v783_v62 }
 0xde3   :  { %v790_v14 = vmul.f32 0.1, %v789_v12  ;;  %1767 = vrcp.f32 %v763_v17 }
 0xde5   :  { %v2180_v16 = vsel %vm777_vm8, %v774_v1, %v790_v14 }
 0xde6   :  { %v822_v21 = vsub.f32 0.0, %v2180_v16 }
 0xde8   :  { %v835_v23 = vmul.f32 %v834_v22, %v822_v21 }
 0xdea   :  { %v836_v26 = vmul.f32 1.442695, %v835_v23 }
 0xdec   :  { %1769 = vpow2.f32 %v836_v26 }
 0xdf0   :  { %v2184_v27 = vpop.eup %1767 }
 0xdf1   :  { %v797_v30 = vmul.f32 %v2184_v27, %v1760_v44  ;;  %v804_v32 = vrot.slane %v2184_v27, 4  ;;  %v796_v40 = vmul.f32 %v2184_v27, %v794_v38 }
 0xdf3   :  { %v806_v33 = vmul.f32 %v804_v32, %v2150_v20 }
 0xdf9   :  { %v1770_v31 = vpop.eup %1769 }
 0xe3c   :  { %v809_v28 = vpop.permute.xlu0 %808 }
 0xe3d   :  { %v811_v29 = vmul.f32 %v2184_v27, %v809_v28 }
 0xe3f   :  { %813 = vrot.lane.b32.xlu0 %v811_v29, %s1949_s17 }
 0xe43   :  { %799 = vrot.lane.b32.xlu0 %v797_v30, %s1949_s17 }
 0xe47   :  { %839 = vrot.lane.b32.xlu0 %v1770_v31, %s1949_s17 }
 0xeb1   :  { %v814_v35 = vpop.permute.xlu0 %813 }
 0xeb2   :  { %v2193_v37 = vadd.f32 %v814_v35, %v806_v33 }
 0xeb4   :  { %818 = vrot.lane.b32.xlu1 %v2193_v37, %s1949_s17 }
 0xeb5   :  { %v800_v39 = vpop.permute.xlu0 %799 }
 0xeb6   :  { %v2198_v41 = vadd.f32 %v800_v39, %v796_v40 }
 0xeb9   :  { %v840_v44 = vpop.permute.xlu0 %839 }
 0xf26   :  { %v819_v42 = vpop.permute.xlu1 %818 }
 0xf27   :  { %v821_v43 = vsub.f32 %v2198_v41, %v819_v42 }
 0xf29   :  { %v842_v46 = vmul.f32 %v840_v44, %v821_v43 }
 0xf2b   :  { %844 = vrot.lane.b32.xlu1 %v842_v46, %s1946_s2 }
 0xf9d   :  { %v845_v1 = vpop.permute.xlu1 %844 }
 0xf9e   :  { %v847_v49 = vadd.f32 %v845_v1, %v2193_v37 }
 0xfa0   :  { %1771 = vtanh.f32 %v847_v49 }
 0xfad   :  { %v1772_v50 = vpop.eup %1771 }
 0xfae   :  { %850 = vrot.lane.b32.xlu0 %v1772_v50, %s1947_s4 }
0x1020   :  { %v851_v51 = vpop.permute.xlu0 %850 }
0x1021   :  { %v853_v52 = vmul.f32 %v2184_v27, %v851_v51 }
0x1023   :  { %855 = vrot.lane.b32.xlu1 %v853_v52, %s1947_s4 }
0x1095   :  { %v2206_v53 = vpop.permute.xlu1 %855 }
0x1096   :  { %1692 = vmatmul.mubr.msk.f32.vlgmr.msra.gmra.mxu0 %vm84_vm0, %v2206_v53 }
0x1097   :  { %1300 = vmatpush1.msra.mxu0 %v2001_v2  ;;  %1339 = vmatprep.mubr.f32.mxu0 %v1945_v0 }
0x1098   :  { %1301 = vmatprep.subr.mxu0 %v2003_v3 }
0x1099   :  { %1302 = vmatpush1.msra.mxu0 %v2006_v4 }
0x109a   :  { %1303 = vmatprep.subr.mxu0 %v2010_v5 }
0x109b   :  { %1304 = vmatpush1.msra.mxu0 %v2014_v6 }
0x109c   :  { %1305 = vmatprep.subr.mxu0 %v2018_v7 }
0x109d   :  { %1306 = vmatpush1.msra.mxu0 %v2022_v8 }
0x1156   :  { %v947_v56 = vpop.f32.mrf.mxu0 }
0x1158   :  { %v949_v58 = vpop.f32.mrf.mxu0 }
0x1159   :  { %v954_v60 = vcombine.low %v947_v56, %v949_v58 }
0x115b   :  { %v956_v61 = vadd.f32 %v954_v60, %v878_v57 }
0x115d   :  { %969 = vrot.lane.b32.xlu1 %v956_v61, %s1947_s4  ;;  %964 = vrot.lane.b32.xlu0 %v956_v61, %s1946_s2  ;;  %v1693_v26 = vmul.f32 -1.442695, %v956_v61 }
0x1161   :  { %1022 = vperm.xlu1 %1715, %v878_v57  }
0x1165   :  { %990 = vrot.lane.b32.xlu1 %v847_v49, %s1949_s17 }
0x11cf   :  { %v965_v62 = vpop.permute.xlu0 %964  ;;  %v970_v14 = vpop.permute.xlu1 %969 }
0x11d0   :  { %v966_v11 = vrot.slane %v965_v62, 4  ;;  %v971_v15 = vrot.slane %v970_v14, 4 }
0x11d2   :  { %1773 = vtanh.f32 %v966_v11  ;;  %v973_v17 = vmul.f32 10.0, %v971_v15 }
0x11d4   :  { %v975_v19 = vmin.f32 %v973_v17, 20.0  ;;  %vm974_vm10 = vcmp.gt.f32.partialorder %v973_v17, 20.0 }
0x11d6   :  { %v976_v21 = vmul.f32 1.442695, %v975_v19 }
0x11d8   :  { %1775 = vpow2.f32 %v976_v21 }
0x11dc   :  { %v1023_v43 = vpop.permute.xlu1 %1022 }
0x11dd   :  { %v1031_v46 = vrot.slane %v1023_v43, %v2056_v47 }
0x11df   :  { %v1774_v12 = vpop.eup %1773 }
0x11e0   :  { %1005 = vrot.lane.b32.xlu0 %v1774_v12, %s1946_s2  ;;  %v991_v11 = vpop.permute.xlu1 %990 }
0x11e5   :  { %v1776_v22 = vpop.eup %1775 }
0x11e6   :  { %v978_v23 = vadd.f32 1.0, %v1776_v22  ;;  %v981_v28 = vmul.f32 -0.5, %v1776_v22  ;;  %v984_v31 = vand.u32 2147483647, %v1776_v22 }
0x11e8   :  { %1777 = vlog2.f32 %v978_v23  ;;  %v982_v30 = vadd.f32 1.0, %v981_v28  ;;  %vm985_vm9 = vcmp.lt.f32.partialorder %v984_v31, 0.0004427343 }
0x11e9   :  { %1779 = vpow2.f32 %v1693_v26 }
0x11ea   :  { %v983_v33 = vmul.f32 %v1776_v22, %v982_v30 }
0x11f5   :  { %v1778_v29 = vpop.eup %1777 }
0x11f6   :  { %v980_v32 = vmul.f32 0.6931472, %v1778_v29  ;;  %v1780_v39 = vpop.eup %1779 }
0x11f7   :  { %v960_v42 = vadd.f32 1.0, %v1780_v39 }
0x11f8   :  { %v986_v35 = vsel %vm985_vm9, %v983_v33, %v980_v32  ;;  %v1075_v33 = vld [vmem:[#allocation2 + $0x28] sm:$0xff] }
0x11f9   :  { %v987_v38 = vmul.f32 0.1, %v986_v35  ;;  %1781 = vrcp.f32 %v960_v42 }
0x11fb   :  { %v2222_v40 = vsel %vm974_vm10, %v971_v15, %v987_v38 }
0x11fc   :  { %v1019_v44 = vsub.f32 0.0, %v2222_v40 }
0x11fe   :  { %v1032_v1 = vmul.f32 %v1031_v46, %v1019_v44 }
0x1200   :  { %v1033_v49 = vmul.f32 1.442695, %v1032_v1 }
0x1202   :  { %1783 = vpow2.f32 %v1033_v49 }
0x1206   :  { %v2226_v50 = vpop.eup %1781 }
0x1207   :  { %v994_v56 = vmul.f32 %v2226_v50, %v1774_v12  ;;  %v1001_v58 = vrot.slane %v2226_v50, 4  ;;  %v993_v15 = vmul.f32 %v2226_v50, %v991_v11 }
0x1209   :  { %v1003_v60 = vmul.f32 %v1001_v58, %v2193_v37 }
0x120f   :  { %v1784_v57 = vpop.eup %1783 }
0x1252   :  { %v1006_v51 = vpop.permute.xlu0 %1005 }
0x1253   :  { %v1008_v52 = vmul.f32 %v2226_v50, %v1006_v51 }
0x1255   :  { %1010 = vrot.lane.b32.xlu0 %v1008_v52, %s1949_s17 }
0x1259   :  { %996 = vrot.lane.b32.xlu0 %v994_v56, %s1949_s17 }
0x125d   :  { %1036 = vrot.lane.b32.xlu0 %v1784_v57, %s1949_s17 }
0x12c7   :  { %v1011_v61 = vpop.permute.xlu0 %1010 }
0x12c8   :  { %v2235_v62 = vadd.f32 %v1011_v61, %v1003_v60 }
0x12ca   :  { %1015 = vrot.lane.b32.xlu1 %v2235_v62, %s1949_s17 }
0x12cb   :  { %v997_v14 = vpop.permute.xlu0 %996 }
0x12cc   :  { %v2240_v12 = vadd.f32 %v997_v14, %v993_v15 }
0x12cf   :  { %v1037_v21 = vpop.permute.xlu0 %1036 }
0x133c   :  { %v1016_v17 = vpop.permute.xlu1 %1015 }
0x133d   :  { %v1018_v19 = vsub.f32 %v2240_v12, %v1016_v17 }
0x133f   :  { %v1039_v22 = vmul.f32 %v1037_v21, %v1018_v19 }
0x1341   :  { %1041 = vrot.lane.b32.xlu1 %v1039_v22, %s1946_s2 }
0x13b3   :  { %v1042_v23 = vpop.permute.xlu1 %1041 }
0x13b4   :  { %v1044_v26 = vadd.f32 %v1042_v23, %v2235_v62 }
0x13b6   :  { %1785 = vtanh.f32 %v1044_v26 }
0x13c3   :  { %v1786_v28 = vpop.eup %1785 }
0x13c4   :  { %1047 = vrot.lane.b32.xlu0 %v1786_v28, %s1947_s4 }
0x1436   :  { %v1048_v29 = vpop.permute.xlu0 %1047 }
0x1437   :  { %v1050_v30 = vmul.f32 %v2226_v50, %v1048_v29 }
0x1439   :  { %1052 = vrot.lane.b32.xlu1 %v1050_v30, %s1947_s4 }
0x14ab   :  { %v2248_v31 = vpop.permute.xlu1 %1052 }
0x14ac   :  { %1694 = vmatmul.mubr.msk.f32.vlgmr.msra.gmra.mxu1 %vm84_vm0, %v2248_v31 }
0x14ad   :  { %1497 = vmatpush1.msra.mxu1 %v2001_v2  ;;  %1536 = vmatprep.mubr.f32.mxu1 %v1945_v0 }
0x14ae   :  { %1498 = vmatprep.subr.mxu1 %v2003_v3 }
0x14af   :  { %1499 = vmatpush1.msra.mxu1 %v2006_v4 }
0x14b0   :  { %1500 = vmatprep.subr.mxu1 %v2010_v5 }
0x14b1   :  { %1501 = vmatpush1.msra.mxu1 %v2014_v6 }
0x14b2   :  { %1502 = vmatprep.subr.mxu1 %v2018_v7 }
0x14b3   :  { %1503 = vmatpush1.msra.mxu1 %v2022_v8 }
0x156c   :  { %v1144_v32 = vpop.f32.mrf.mxu1 }
0x156e   :  { %v1146_v35 = vpop.f32.mrf.mxu1 }
0x156f   :  { %v1151_v38 = vcombine.low %v1144_v32, %v1146_v35 }
0x1571   :  { %v1153_v39 = vadd.f32 %v1151_v38, %v1075_v33 }
0x1573   :  { %1166 = vrot.lane.b32.xlu1 %v1153_v39, %s1947_s4  ;;  %1161 = vrot.lane.b32.xlu0 %v1153_v39, %s1946_s2  ;;  %v1695_v44 = vmul.f32 -1.442695, %v1153_v39 }
0x1577   :  { %1219 = vperm.xlu1 %1715, %v1075_v33  }
0x157b   :  { %1187 = vrot.lane.b32.xlu1 %v1044_v26, %s1949_s17 }
0x15e5   :  { %v1162_v0 = vpop.permute.xlu0 %1161  ;;  %v1167_v4 = vpop.permute.xlu1 %1166 }
0x15e6   :  { %v1163_v2 = vrot.slane %v1162_v0, 4  ;;  %v1168_v5 = vrot.slane %v1167_v4, 4 }
0x15e8   :  { %1787 = vtanh.f32 %v1163_v2  ;;  %v1170_v6 = vmul.f32 10.0, %v1168_v5 }
0x15ea   :  { %v1172_v7 = vmin.f32 %v1170_v6, 20.0  ;;  %vm1171_vm12 = vcmp.gt.f32.partialorder %v1170_v6, 20.0 }
0x15ec   :  { %v1173_v8 = vmul.f32 1.442695, %v1172_v7 }
0x15ee   :  { %1789 = vpow2.f32 %v1173_v8 }
0x15f2   :  { %v1220_v14 = vpop.permute.xlu1 %1219 }
0x15f3   :  { %v1228_v17 = vrot.slane %v1220_v14, %v2056_v47 }
0x15f5   :  { %v1788_v3 = vpop.eup %1787 }
0x15f6   :  { %1202 = vrot.lane.b32.xlu0 %v1788_v3, %s1946_s2  ;;  %v1188_v38 = vpop.permute.xlu1 %1187 }
0x15fb   :  { %v1790_v42 = vpop.eup %1789 }
0x15fc   :  { %v1175_v43 = vadd.f32 1.0, %v1790_v42  ;;  %v1178_v46 = vmul.f32 -0.5, %v1790_v42  ;;  %v1181_v51 = vand.u32 2147483647, %v1790_v42 }
0x15fe   :  { %1791 = vlog2.f32 %v1175_v43  ;;  %v1179_v49 = vadd.f32 1.0, %v1178_v46  ;;  %vm1182_vm11 = vcmp.lt.f32.partialorder %v1181_v51, 0.0004427343 }
0x15ff   :  { %1793 = vpow2.f32 %v1695_v44 }
0x1600   :  { %v1180_v56 = vmul.f32 %v1790_v42, %v1179_v49  ;;  %v1272_v49 = vld [vmem:[#allocation2 + $0x30] sm:$0xff] }
0x160b   :  { %v1792_v1 = vpop.eup %1791 }
0x160c   :  { %v1177_v52 = vmul.f32 0.6931472, %v1792_v1  ;;  %v1794_v60 = vpop.eup %1793 }
0x160d   :  { %v1157_v11 = vadd.f32 1.0, %v1794_v60 }
0x160e   :  { %v1183_v57 = vsel %vm1182_vm11, %v1180_v56, %v1177_v52 }
0x160f   :  { %v1184_v58 = vmul.f32 0.1, %v1183_v57  ;;  %1795 = vrcp.f32 %v1157_v11 }
0x1611   :  { %v2264_v61 = vsel %vm1171_vm12, %v1168_v5, %v1184_v58 }
0x1612   :  { %v1216_v15 = vsub.f32 0.0, %v2264_v61 }
0x1614   :  { %v1229_v19 = vmul.f32 %v1228_v17, %v1216_v15 }
0x1616   :  { %v1230_v21 = vmul.f32 1.442695, %v1229_v19 }
0x1618   :  { %1797 = vpow2.f32 %v1230_v21 }
0x161c   :  { %v2268_v22 = vpop.eup %1795 }
0x161d   :  { %v1191_v28 = vmul.f32 %v2268_v22, %v1788_v3  ;;  %v1198_v30 = vrot.slane %v2268_v22, 4  ;;  %v1190_v0 = vmul.f32 %v2268_v22, %v1188_v38 }
0x161f   :  { %v1200_v32 = vmul.f32 %v1198_v30, %v2235_v62 }
0x1625   :  { %v1798_v29 = vpop.eup %1797 }
0x1668   :  { %v1203_v23 = vpop.permute.xlu0 %1202 }
0x1669   :  { %v1205_v26 = vmul.f32 %v2268_v22, %v1203_v23 }
0x166b   :  { %1207 = vrot.lane.b32.xlu0 %v1205_v26, %s1949_s17 }
0x166f   :  { %1193 = vrot.lane.b32.xlu0 %v1191_v28, %s1949_s17 }
0x1673   :  { %1233 = vrot.lane.b32.xlu0 %v1798_v29, %s1949_s17 }
0x16dd   :  { %v1208_v33 = vpop.permute.xlu0 %1207 }
0x16de   :  { %v2277_v35 = vadd.f32 %v1208_v33, %v1200_v32 }
0x16e0   :  { %1212 = vrot.lane.b32.xlu1 %v2277_v35, %s1949_s17 }
0x16e1   :  { %v1194_v39 = vpop.permute.xlu0 %1193 }
0x16e2   :  { %v2282_v2 = vadd.f32 %v1194_v39, %v1190_v0 }
0x16e5   :  { %v1234_v5 = vpop.permute.xlu0 %1233 }
0x1752   :  { %v1213_v3 = vpop.permute.xlu1 %1212 }
0x1753   :  { %v1215_v4 = vsub.f32 %v2282_v2, %v1213_v3 }
0x1755   :  { %v1236_v6 = vmul.f32 %v1234_v5, %v1215_v4 }
0x1757   :  { %1238 = vrot.lane.b32.xlu1 %v1236_v6, %s1946_s2 }
0x17c9   :  { %v1239_v7 = vpop.permute.xlu1 %1238 }
0x17ca   :  { %v1241_v8 = vadd.f32 %v1239_v7, %v2277_v35 }
0x17cc   :  { %1799 = vtanh.f32 %v1241_v8 }
0x17d9   :  { %v1800_v42 = vpop.eup %1799 }
0x17da   :  { %1244 = vrot.lane.b32.xlu0 %v1800_v42, %s1947_s4 }
0x184c   :  { %v1245_v43 = vpop.permute.xlu0 %1244 }
0x184d   :  { %v1247_v44 = vmul.f32 %v2268_v22, %v1245_v43 }
0x184f   :  { %1249 = vrot.lane.b32.xlu1 %v1247_v44, %s1947_s4 }
0x18c1   :  { %v2290_v46 = vpop.permute.xlu1 %1249 }
0x18c2   :  { %1696 = vmatmul.mubr.msk.f32.vlgmr.msra.gmra.mxu0 %vm84_vm0, %v2290_v46 }
0x1982   :  { %v1341_v1 = vpop.f32.mrf.mxu0 }
0x1984   :  { %v1343_v51 = vpop.f32.mrf.mxu0 }
0x1985   :  { %v1348_v52 = vcombine.low %v1341_v1, %v1343_v51 }
0x1987   :  { %v1350_v56 = vadd.f32 %v1348_v52, %v1272_v49 }
0x1989   :  { %1363 = vrot.lane.b32.xlu1 %v1350_v56, %s1947_s4  ;;  %1358 = vrot.lane.b32.xlu0 %v1350_v56, %s1946_s2  ;;  %v1697_v26 = vmul.f32 -1.442695, %v1350_v56 }
0x198d   :  { %1416 = vperm.xlu1 %1715, %v1272_v49  }
0x1991   :  { %1384 = vrot.lane.b32.xlu1 %v1241_v8, %s1949_s17 }
0x19fb   :  { %v1359_v57 = vpop.permute.xlu0 %1358  ;;  %v1364_v11 = vpop.permute.xlu1 %1363 }
0x19fc   :  { %v1360_v58 = vrot.slane %v1359_v57, 4  ;;  %v1365_v14 = vrot.slane %v1364_v11, 4 }
0x19fe   :  { %1801 = vtanh.f32 %v1360_v58  ;;  %v1367_v15 = vmul.f32 10.0, %v1365_v14 }
0x1a00   :  { %v1369_v17 = vmin.f32 %v1367_v15, 20.0  ;;  %vm1368_vm14 = vcmp.gt.f32.partialorder %v1367_v15, 20.0 }
0x1a02   :  { %v1370_v19 = vmul.f32 1.442695, %v1369_v17 }
0x1a04   :  { %1803 = vpow2.f32 %v1370_v19 }
0x1a08   :  { %v1417_v6 = vpop.permute.xlu1 %1416 }
0x1a09   :  { %v1425_v8 = vrot.slane %v1417_v6, %v2056_v47 }
0x1a0b   :  { %v1802_v60 = vpop.eup %1801 }
0x1a0c   :  { %1399 = vrot.lane.b32.xlu0 %v1802_v60, %s1946_s2 }
0x1a11   :  { %v1804_v21 = vpop.eup %1803 }
0x1a12   :  { %v1372_v23 = vadd.f32 1.0, %v1804_v21  ;;  %v1375_v28 = vmul.f32 -0.5, %v1804_v21  ;;  %v1378_v32 = vand.u32 2147483647, %v1804_v21 }
0x1a14   :  { %1805 = vlog2.f32 %v1372_v23  ;;  %v1376_v30 = vadd.f32 1.0, %v1375_v28  ;;  %vm1379_vm13 = vcmp.lt.f32.partialorder %v1378_v32, 0.0004427343 }
0x1a15   :  { %1807 = vpow2.f32 %v1697_v26 }
0x1a16   :  { %v1377_v38 = vmul.f32 %v1804_v21, %v1376_v30 }
0x1a21   :  { %v1806_v29 = vpop.eup %1805 }
0x1a22   :  { %v1374_v33 = vmul.f32 0.6931472, %v1806_v29  ;;  %v1808_v3 = vpop.eup %1807 }
0x1a23   :  { %v1354_v5 = vadd.f32 1.0, %v1808_v3 }
0x1a24   :  { %v1380_v39 = vsel %vm1379_vm13, %v1377_v38, %v1374_v33 }
0x1a25   :  { %v1381_v0 = vmul.f32 0.1, %v1380_v39  ;;  %1809 = vrcp.f32 %v1354_v5 }
0x1a27   :  { %v2298_v4 = vsel %vm1368_vm14, %v1365_v14, %v1381_v0  ;;  %v1385_v14 = vpop.permute.xlu1 %1384  ;;  %v1469_v0 = vld [vmem:[#allocation2 + $0x38] sm:$0xff] }
0x1a28   :  { %v1413_v7 = vsub.f32 0.0, %v2298_v4 }
0x1a2a   :  { %v1426_v42 = vmul.f32 %v1425_v8, %v1413_v7 }
0x1a2c   :  { %v1427_v43 = vmul.f32 1.442695, %v1426_v42 }
0x1a2e   :  { %1811 = vpow2.f32 %v1427_v43 }
0x1a32   :  { %v2302_v44 = vpop.eup %1809 }
0x1a33   :  { %v1388_v51 = vmul.f32 %v2302_v44, %v1802_v60  ;;  %v1395_v56 = vrot.slane %v2302_v44, 4  ;;  %v1387_v17 = vmul.f32 %v2302_v44, %v1385_v14 }
0x1a35   :  { %v1397_v57 = vmul.f32 %v1395_v56, %v2277_v35 }
0x1a3b   :  { %v1812_v52 = vpop.eup %1811 }
0x1a7e   :  { %v1400_v1 = vpop.permute.xlu0 %1399 }
0x1a7f   :  { %v1402_v49 = vmul.f32 %v2302_v44, %v1400_v1 }
0x1a81   :  { %1404 = vrot.lane.b32.xlu0 %v1402_v49, %s1949_s17 }
0x1a85   :  { %1390 = vrot.lane.b32.xlu0 %v1388_v51, %s1949_s17 }
0x1a89   :  { %1430 = vrot.lane.b32.xlu0 %v1812_v52, %s1949_s17 }
0x1af3   :  { %v1405_v58 = vpop.permute.xlu0 %1404 }
0x1af4   :  { %v2311_v11 = vadd.f32 %v1405_v58, %v1397_v57 }
0x1af6   :  { %1409 = vrot.lane.b32.xlu1 %v2311_v11, %s1949_s17 }
0x1af7   :  { %v1391_v15 = vpop.permute.xlu0 %1390 }
0x1af8   :  { %v2316_v60 = vadd.f32 %v1391_v15, %v1387_v17 }
0x1afb   :  { %v1431_v23 = vpop.permute.xlu0 %1430 }
0x1b68   :  { %v1410_v19 = vpop.permute.xlu1 %1409 }
0x1b69   :  { %v1412_v21 = vsub.f32 %v2316_v60, %v1410_v19 }
0x1b6b   :  { %v1433_v26 = vmul.f32 %v1431_v23, %v1412_v21 }
0x1b6d   :  { %1435 = vrot.lane.b32.xlu1 %v1433_v26, %s1946_s2 }
0x1bdf   :  { %v1436_v28 = vpop.permute.xlu1 %1435 }
0x1be0   :  { %v1438_v29 = vadd.f32 %v1436_v28, %v2311_v11 }
0x1be2   :  { %1813 = vtanh.f32 %v1438_v29 }
0x1bef   :  { %v1814_v30 = vpop.eup %1813 }
0x1bf0   :  { %1441 = vrot.lane.b32.xlu0 %v1814_v30, %s1947_s4 }
0x1c62   :  { %v1442_v32 = vpop.permute.xlu0 %1441 }
0x1c63   :  { %v1444_v33 = vmul.f32 %v2302_v44, %v1442_v32 }
0x1c65   :  { %1446 = vrot.lane.b32.xlu1 %v1444_v33, %s1947_s4 }
0x1cd7   :  { %v2324_v38 = vpop.permute.xlu1 %1446 }
0x1cd8   :  { %1698 = vmatmul.mubr.msk.f32.vlgmr.msra.gmra.mxu1 %vm84_vm0, %v2324_v38 }
0x1d98   :  { %v1538_v39 = vpop.f32.mrf.mxu1 }
0x1d9a   :  { %v1540_v3 = vpop.f32.mrf.mxu1 }
0x1d9b   :  { %v1545_v5 = vcombine.low %v1538_v39, %v1540_v3 }
0x1d9d   :  { %v1547_v6 = vadd.f32 %v1545_v5, %v1469_v0 }
0x1d9f   :  { %1560 = vrot.lane.b32.xlu1 %v1547_v6, %s1947_s4  ;;  %1555 = vrot.lane.b32.xlu0 %v1547_v6, %s1946_s2  ;;  %v1699_v58 = vmul.f32 -1.442695, %v1547_v6 }
0x1da3   :  { %1613 = vperm.xlu1 %1715, %v1469_v0  }
0x1da7   :  { %1581 = vrot.lane.b32.xlu1 %v1438_v29, %s1949_s17 }
0x1e11   :  { %v1556_v7 = vpop.permute.xlu0 %1555  ;;  %v1561_v43 = vpop.permute.xlu1 %1560 }
0x1e12   :  { %v1557_v8 = vrot.slane %v1556_v7, 4  ;;  %v1562_v1 = vrot.slane %v1561_v43, 4 }
0x1e14   :  { %1815 = vtanh.f32 %v1557_v8  ;;  %v1564_v49 = vmul.f32 10.0, %v1562_v1 }
0x1e16   :  { %v1566_v51 = vmin.f32 %v1564_v49, 20.0  ;;  %vm1565_vm1 = vcmp.gt.f32.partialorder %v1564_v49, 20.0 }
0x1e18   :  { %v1567_v52 = vmul.f32 1.442695, %v1566_v51 }
0x1e1a   :  { %1817 = vpow2.f32 %v1567_v52 }
0x1e1e   :  { %v1614_v33 = vpop.permute.xlu1 %1613 }
0x1e1f   :  { %v1622_v0 = vrot.slane %v1614_v33, %v2056_v47 }
0x1e21   :  { %v1816_v42 = vpop.eup %1815 }
0x1e22   :  { %1596 = vrot.lane.b32.xlu0 %v1816_v42, %s1946_s2  ;;  %v1582_v47 = vpop.permute.xlu1 %1581 }
0x1e27   :  { %v1818_v56 = vpop.eup %1817 }
0x1e28   :  { %v1569_v57 = vadd.f32 1.0, %v1818_v56  ;;  %v1572_v14 = vmul.f32 -0.5, %v1818_v56  ;;  %v1575_v19 = vand.u32 2147483647, %v1818_v56 }
0x1e2a   :  { %1819 = vlog2.f32 %v1569_v57  ;;  %v1573_v17 = vadd.f32 1.0, %v1572_v14  ;;  %vm1576_vm15 = vcmp.lt.f32.partialorder %v1575_v19, 0.0004427343 }
0x1e2b   :  { %1821 = vpow2.f32 %v1699_v58 }
0x1e2c   :  { %v1574_v23 = vmul.f32 %v1818_v56, %v1573_v17 }
0x1e37   :  { %v1820_v15 = vpop.eup %1819 }
0x1e38   :  { %v1571_v21 = vmul.f32 0.6931472, %v1820_v15  ;;  %v1822_v29 = vpop.eup %1821 }
0x1e39   :  { %v1551_v32 = vadd.f32 1.0, %v1822_v29 }
0x1e3a   :  { %v1577_v26 = vsel %vm1576_vm15, %v1574_v23, %v1571_v21 }
0x1e3b   :  { %v1578_v28 = vmul.f32 0.1, %v1577_v26  ;;  %1823 = vrcp.f32 %v1551_v32 }
0x1e3d   :  { %v2332_v30 = vsel %vm1565_vm1, %v1562_v1, %v1578_v28 }
0x1e3e   :  { %v1610_v39 = vsub.f32 0.0, %v2332_v30 }
0x1e40   :  { %v1623_v3 = vmul.f32 %v1622_v0, %v1610_v39 }
0x1e42   :  { %v1624_v5 = vmul.f32 1.442695, %v1623_v3 }
0x1e44   :  { %1825 = vpow2.f32 %v1624_v5 }
0x1e48   :  { %v1824_v6 = vpop.eup %1823 }
0x1e49   :  { %v1585_v43 = vmul.f32 %v1824_v6, %v1816_v42  ;;  %v1592_v49 = vrot.slane %v1824_v6, 4  ;;  %v1584_v58 = vmul.f32 %v1824_v6, %v1582_v47 }
0x1e4b   :  { %v1594_v51 = vmul.f32 %v1592_v49, %v2311_v11 }
0x1e51   :  { %v1826_v1 = vpop.eup %1825 }
0x1e94   :  { %v1597_v7 = vpop.permute.xlu0 %1596 }
0x1e95   :  { %v1599_v8 = vmul.f32 %v1824_v6, %v1597_v7 }
0x1e97   :  { %1601 = vrot.lane.b32.xlu0 %v1599_v8, %s1949_s17 }
0x1e9b   :  { %1587 = vrot.lane.b32.xlu0 %v1585_v43, %s1949_s17 }
0x1e9f   :  { %1627 = vrot.lane.b32.xlu0 %v1826_v1, %s1949_s17 }
0x1f09   :  { %v1602_v52 = vpop.permute.xlu0 %1601 }
0x1f0a   :  { %v1604_v56 = vadd.f32 %v1602_v52, %v1594_v51 }
0x1f0c   :  { %1606 = vrot.lane.b32.xlu1 %v1604_v56, %s1949_s17 }
0x1f0d   :  { %v1588_v57 = vpop.permute.xlu0 %1587 }
0x1f0e   :  { %v1590_v14 = vadd.f32 %v1588_v57, %v1584_v58 }
0x1f11   :  { %v1628_v19 = vpop.permute.xlu0 %1627 }
0x1f7e   :  { %v1607_v15 = vpop.permute.xlu1 %1606 }
0x1f7f   :  { %v1609_v17 = vsub.f32 %v1590_v14, %v1607_v15 }
0x1f81   :  { %v1630_v42 = vmul.f32 %v1628_v19, %v1609_v17 }
0x1f83   :  { %1632 = vrot.lane.b32.xlu1 %v1630_v42, %s1946_s2 }
0x1f87   :  { %263 = vrot.lane.b32.xlu1 %v2050_v34, %s1946_s2 }
0x1f8b   :  { %661 = vrot.lane.b32.xlu1 %v2141_v10, %s1946_s2 }
0x1f8f   :  { %1055 = vrot.lane.b32.xlu1 %v2226_v50, %s1946_s2 }
0x1f93   :  { %1449 = vrot.lane.b32.xlu1 %v2302_v44, %s1946_s2 }
0x1f97   :  { %1646 = vrot.lane.b32.xlu1 %v1824_v6, %s1946_s2 }
0x1f9b   :  { %468 = vrot.lane.b32.xlu1 %v2112_v13, %s1949_s17 }
0x1f9f   :  { %862 = vrot.lane.b32.xlu1 %v2198_v41, %s1949_s17 }
0x1fa3   :  { %1256 = vrot.lane.b32.xlu1 %v2282_v2, %s1949_s17 }
0x1fa7   :  { %1650 = vrot.lane.b32.xlu1 %v1590_v14, %s1949_s17 }
0x1fab   :  { %471 = vrot.lane.b32.xlu1 %v2107_v9, %s1946_s2 }
0x1faf   :  { %865 = vrot.lane.b32.xlu1 %v2193_v37, %s1946_s2 }
0x1fb3   :  { %1259 = vrot.lane.b32.xlu1 %v2277_v35, %s1946_s2 }
0x1fb7   :  { %1653 = vrot.lane.b32.xlu1 %v1604_v56, %s1946_s2 }
0x1ff5   :  { %v1633_v34 = vpop.permute.xlu1 %1632 }
0x1ff6   :  { %v1635_v13 = vadd.f32 %v1633_v34, %v1604_v56 }
0x1ff8   :  { %1827 = vtanh.f32 %v1635_v13 }
0x2005   :  { %v1828_v10 = vpop.eup %1827 }
0x2006   :  { %1638 = vrot.lane.b32.xlu0 %v1828_v10, %s1947_s4 }
0x200a   :  { %464 = vrot.lane.b32.xlu0 %v2098_v54, %s1946_s2  ;;  %v264_v54 = vpop.permute.xlu1 %263 }
0x200b   :  { %v273_v8 = vsel %vm84_vm0, %v2077_v18, %v264_v54 }
0x200e   :  { %858 = vrot.lane.b32.xlu0 %v2184_v27, %s1946_s2 }
0x2012   :  { %1252 = vrot.lane.b32.xlu0 %v2268_v22, %s1946_s2 }
0x2016   :  { %267 = vrot.lane.b32.xlu0 %v2069_v63, %s1949_s17  ;;  %v662_v63 = vpop.permute.xlu1 %661 }
0x2017   :  { %v671_v51 = vsel %vm84_vm0, %v2163_v36, %v662_v63 }
0x201a   :  { %665 = vrot.lane.b32.xlu0 %v2155_v25, %s1949_s17  ;;  %v1056_v9 = vpop.permute.xlu1 %1055 }
0x201b   :  { %v1065_v47 = vsel %vm84_vm0, %v2248_v31, %v1056_v9 }
0x201e   :  { %1059 = vrot.lane.b32.xlu0 %v2240_v12, %s1949_s17  ;;  %v1450_v27 = vpop.permute.xlu1 %1449 }
0x2022   :  { %1453 = vrot.lane.b32.xlu0 %v2316_v60, %s1949_s17  ;;  %v1647_v25 = vpop.permute.xlu1 %1646 }
0x2026   :  { %270 = vrot.lane.b32.xlu0 %v2064_v59, %s1946_s2  ;;  %v469_v37 = vpop.permute.xlu1 %468 }
0x202a   :  { %668 = vrot.lane.b32.xlu0 %v2150_v20, %s1946_s2  ;;  %v863_v41 = vpop.permute.xlu1 %862 }
0x202e   :  { %1062 = vrot.lane.b32.xlu0 %v2235_v62, %s1946_s2  ;;  %v1257_v50 = vpop.permute.xlu1 %1256 }
0x2032   :  { %v1651_v12 = vpop.permute.xlu1 %1650 }
0x2036   :  { %v472_v2 = vpop.permute.xlu1 %471 }
0x203a   :  { %v866_v21 = vpop.permute.xlu1 %865 }
0x203e   :  { %v1260_v39 = vpop.permute.xlu1 %1259 }
0x2078   :  { %v1639_v22 = vpop.permute.xlu0 %1638 }
0x2079   :  { %v1641_v35 = vmul.f32 %v1824_v6, %v1639_v22  ;;  %v1459_v6 = vsel %vm84_vm0, %v2324_v38, %v1450_v27 }
0x207b   :  { %1643 = vrot.lane.b32.xlu0 %v1641_v35, %s1947_s4 }
0x207c   :  { %v465_v59 = vpop.permute.xlu0 %464 }
0x207d   :  { %v474_v20 = vsel %vm84_vm0, %v2120_v24, %v465_v59 }
0x207e   :  { %v475_v62 = vsel %vm274_vm2, %v474_v20, %v469_v37 }
0x207f   :  { %v476_v60 = vsel %vm276_vm3, %v475_v62, %v472_v2  ;;  %1456 = vrot.lane.b32.xlu0 %v2311_v11, %s1946_s2 }
0x2080   :  { %v479_v23 = vcombine.low %v476_v60, %v2094_v45  ;;  %v859_v26 = vpop.permute.xlu0 %858 }
0x2081   :  { %v868_v28 = vsel %vm84_vm0, %v2206_v53, %v859_v26 }
0x2082   :  { %482 = vst.msk [vmem:[#allocation10 + $0x8] sm:$0xff] %vm2390_vm6, %v479_v23  ;;  %v869_v24 = vsel %vm274_vm2, %v868_v28, %v863_v41 }
0x2083   :  { %v870_v29 = vsel %vm276_vm3, %v869_v24, %v866_v21 }
0x2084   :  { %v873_v32 = vcombine.low %v870_v29, %v2180_v16  ;;  %v1253_v33 = vpop.permute.xlu0 %1252 }
0x2085   :  { %v1262_v11 = vsel %vm84_vm0, %v2290_v46, %v1253_v33 }
0x2086   :  { %876 = vst.msk [vmem:[#allocation10 + $0x18] sm:$0xff] %vm2390_vm6, %v873_v32  ;;  %v1263_v45 = vsel %vm274_vm2, %v1262_v11, %v1257_v50 }
0x2087   :  { %v1264_v53 = vsel %vm276_vm3, %v1263_v45, %v1260_v39 }
0x2088   :  { %v1267_v0 = vcombine.low %v1264_v53, %v2264_v61  ;;  %v268_v3 = vpop.permute.xlu0 %267 }
0x2089   :  { %v275_v43 = vsel %vm274_vm2, %v273_v8, %v268_v3 }
0x208a   :  { %1270 = vst.msk [vmem:[#allocation10 + $0x28] sm:$0xff] %vm2390_vm6, %v1267_v0 }
0x208c   :  { %v666_v5 = vpop.permute.xlu0 %665 }
0x208d   :  { %v672_v52 = vsel %vm274_vm2, %v671_v51, %v666_v5 }
0x2090   :  { %v1060_v16 = vpop.permute.xlu0 %1059 }
0x2091   :  { %v1066_v57 = vsel %vm274_vm2, %v1065_v47, %v1060_v16 }
0x2094   :  { %v1454_v46 = vpop.permute.xlu0 %1453 }
0x2095   :  { %v1460_v7 = vsel %vm274_vm2, %v1459_v6, %v1454_v46 }
0x2098   :  { %v271_v1 = vpop.permute.xlu0 %270 }
0x2099   :  { %v277_v61 = vsel %vm276_vm3, %v275_v43, %v271_v1 }
0x209a   :  { %v280_v49 = vcombine.low %v277_v61, %v2058_v48 }
0x209c   :  { %285 = vst.msk [vmem:[#allocation10] sm:$0xff] %vm2390_vm6, %v280_v49  ;;  %v669_v38 = vpop.permute.xlu0 %668 }
0x209d   :  { %v673_v56 = vsel %vm276_vm3, %v672_v52, %v669_v38 }
0x209e   :  { %v676_v18 = vcombine.low %v673_v56, %v2137_v55  ;;  %v1654_v55 = vpop.permute.xlu1 %1653 }
0x20a0   :  { %679 = vst.msk [vmem:[#allocation10 + $0x10] sm:$0xff] %vm2390_vm6, %v676_v18  ;;  %v1063_v48 = vpop.permute.xlu0 %1062 }
0x20a1   :  { %v1067_v36 = vsel %vm276_vm3, %v1066_v57, %v1063_v48 }
0x20a2   :  { %v1070_v58 = vcombine.low %v1067_v36, %v2222_v40 }
0x20a4   :  { %1073 = vst.msk [vmem:[#allocation10 + $0x20] sm:$0xff] %vm2390_vm6, %v1070_v58 }
0x20ed   :  { %v1644_v14 = vpop.permute.xlu0 %1643 }
0x20ee   :  { %v1656_v15 = vsel %vm84_vm0, %v1644_v14, %v1647_v25 }
0x20ef   :  { %v1657_v17 = vsel %vm274_vm2, %v1656_v15, %v1651_v12 }
0x20f0   :  { %v1658_v31 = vsel %vm276_vm3, %v1657_v17, %v1654_v55 }
0x20f1   :  { %v1661_v19 = vcombine.low %v1658_v31, %v2332_v30  ;;  %v1457_v42 = vpop.permute.xlu0 %1456 }
0x20f2   :  { %v1461_v34 = vsel %vm276_vm3, %v1460_v7, %v1457_v42 }
0x20f3   :  { %1664 = vst.msk [vmem:[#allocation10 + $0x38] sm:$0xff] %vm2390_vm6, %v1661_v19  ;;  %v1464_v40 = vcombine.low %v1461_v34, %v2298_v4 }
0x20f5   :  { %1467 = vst.msk [vmem:[#allocation10 + $0x30] sm:$0xff] %vm2390_vm6, %v1464_v40 }
0x20f6   :  { %1920 = shalt.err (!%p1917_p10)
}
0x20f7   :  { %1676 = dma.vmem_to_hbm [thread:$0]  %s1671_s18, 1024, %s2459_s5, [#allocation4], %s1941_s28, %s1941_s28, %s1942_s29  }
0x20f8   :  { %1935 = dma.done.wait [#allocation4], 1024  }
0x20f9   :  { %1936 = vsyncadd [#allocation4], 4294966272 }
0x20fa   :  { %1680 = vsyncpa [#allocation3], 1 }
0x20fb   :  { %1681 = vsyncpa [#allocation6], 1 }
0x20fc   :  { %1682 = vsyncpa [#allocation9], 1 }
0x20fd   :  { %1683 = vsyncpa [#allocation4], 1 }

</bundles_post_ra>
